<compile_context>
chip_gen: v7x
topology: tpu7x:2x2x1
jax: 0.10.0
libtpu: 0.0.40
codegen_flags: <defaults>
</compile_context>

<pallas_src>
import numpy as np
import jax
import jax.numpy as jnp
from jax import lax
from jax.experimental import pallas as pl
from jax.experimental.pallas import tpu as pltpu  # noqa: F401  (kept for completeness)

# ---------------- problem sizes (small, consistent with the module) ----------------
N_NODES = 8
N_EDGES = 32

S_IN, V_IN = 16, 4                  # node scalar / vector channels
S_OUT, V_OUT = 16, 4                # output scalar / vector channels
E_S, E_V = 8, 2                     # edge scalar / vector channels

S_MSG = 2 * S_IN + E_S              # 40  message scalar input dim
V_MSG = 2 * V_IN + E_V              # 10  message vector input dim

HID0 = max(V_MSG, V_OUT)            # 10  (bottleneck = 1)
HID1 = max(V_OUT, V_OUT)            # 4

FUSE_COLS = S_OUT + 3 * V_OUT       # 28 = [s_pre(16) | gate_pre interleaved x3 (12)]

# edge-buffer column offsets: [es | ev(ch-major) | frames | row | col]
_C_EV = E_S
_C_FR = E_S + 3 * E_V
_C_ROW = _C_FR + 9
_C_COL = _C_ROW + 1
_EDGE_COLS = _C_COL + 1             # 25

# ---------------- packed-weight layout (static, shared by packer and kernel) -------
_BLOCK_SHAPES = [
    ('wd0', 3 * V_MSG, 3 * HID0),          # down-proj layer 0 (rows permuted for ch-major in)
    ('wf0', S_MSG + 4 * HID0, FUSE_COLS),  # fused [scalar | gate] weight, layer 0 (80, 28)
    ('bf0', 1, FUSE_COLS),
    ('wu0', 3 * HID0, 3 * V_OUT),          # up-proj layer 0 (cols permuted to ch-major out)
    ('wd1', 3 * V_OUT, 3 * HID1),
    ('wf1', S_OUT + 4 * HID1, FUSE_COLS),  # (32, 28)
    ('bf1', 1, FUSE_COLS),
    ('wu1', 3 * HID1, 3 * V_OUT),
    ('attn', 1, S_OUT + 1),                # [wa (1,16) | ba]
]


def _make_layout(blocks):
    layout, off = {}, 0
    for name, r, c in blocks:
        layout[name] = (off, r, c)
        off = ((off + r + 7) // 8) * 8          # sublane-align every band start
    return layout, off


_LAYOUT, _WP_ROWS = _make_layout(_BLOCK_SHAPES)   # 232 rows
_WP_COLS = 32                                     # >= widest block (30)


def _interleave_rows_bd3(w):
    """(Vin, H) -> (3*Vin, 3*H); row (m*3+c) feeds coord-block c with weight w[m, :].

    Consumes channel-major vector input, produces coordinate-major hidden output."""
    w = np.asarray(w, np.float32)
    vin, h = w.shape
    out = np.zeros((3 * vin, 3 * h), np.float32)
    for c in range(3):
        out[c::3, c * h:(c + 1) * h] = w
    return out


def _bd3_colinterleave(w):
    """(H, Vout) -> (3*H, 3*Vout); coord-major rows, channel-major (interleaved) columns."""
    w = np.asarray(w, np.float32)
    h, vout = w.shape
    out = np.zeros((3 * h, 3 * vout), np.float32)
    for c in range(3):
        out[c * h:(c + 1) * h, c::3] = w
    return out


def pack_params(P):
    """Pack all weights/biases into one (232, 32) f32 buffer (done once, outside the step).

    The vector-gate Linear is folded into the fused scalar weight: since
    gate_pre = (msg @ ws + bs) @ wg + bg = msg @ (ws @ wg) + (bs @ wg + bg),
    the fused matmul outputs [s_pre | gate_pre repeated x3 interleaved] in one pass."""
    ws0 = np.asarray(P['ws0'], np.float32); wg0 = np.asarray(P['wg0'], np.float32)
    bs0 = np.asarray(P['bs0'], np.float32); bg0 = np.asarray(P['bg0'], np.float32)
    ws1 = np.asarray(P['ws1'], np.float32); wg1 = np.asarray(P['wg1'], np.float32)
    bs1 = np.asarray(P['bs1'], np.float32); bg1 = np.asarray(P['bg1'], np.float32)

    wsg0, bsg0 = ws0 @ wg0, bs0 @ wg0 + bg0
    wsg1, bsg1 = ws1 @ wg1, bs1 @ wg1 + bg1

    vals = {
        'wd0': _interleave_rows_bd3(P['wd0']),
        'wf0': np.concatenate([ws0, np.repeat(wsg0, 3, axis=1)], axis=1),
        'bf0': np.concatenate([bs0, np.repeat(bsg0, 3, axis=1)], axis=1),
        'wu0': _bd3_colinterleave(P['wu0']),
        'wd1': _interleave_rows_bd3(P['wd1']),
        'wf1': np.concatenate([ws1, np.repeat(wsg1, 3, axis=1)], axis=1),
        'bf1': np.concatenate([bs1, np.repeat(bsg1, 3, axis=1)], axis=1),
        'wu1': _bd3_colinterleave(P['wu1']),
        'attn': np.concatenate([np.asarray(P['wa'], np.float32).T,
                                np.asarray(P['ba'], np.float32)], axis=1),
    }
    wp = np.zeros((_WP_ROWS, _WP_COLS), np.float32)
    for name, r, c in _BLOCK_SHAPES:
        o = _LAYOUT[name][0]
        wp[o:o + r, 0:c] = vals[name]
    return jnp.asarray(wp)


# ---------------- Pallas kernel: gather + message fusion + attention + scatter -----
def gcp_mp_kernel(node_ref, edge_ref, rowlane_ref, wp_ref, out_ref):
    def W(name):
        o, r, c = _LAYOUT[name]
        return wp_ref[o:o + r, 0:c]

    def dot(a, b):
        return jnp.dot(a, b, preferred_element_type=jnp.float32)

    node = node_ref[...]                               # (N, 28) = [ns(16) | nv ch-major(12)]
    edge = edge_ref[...]                               # (E, 25)
    n_nodes = node.shape[0]
    n_edges = edge.shape[0]

    es = edge[:, 0:E_S]                                # (E, 8)
    ev = edge[:, _C_EV:_C_EV + 3 * E_V]                # (E, 6)  channel-major
    fr = edge[:, _C_FR:_C_FR + 9]                      # (E, 9)
    rowi = edge[:, _C_ROW:_C_ROW + 1].astype(jnp.int32)
    coli = edge[:, _C_COL:_C_COL + 1].astype(jnp.int32)

    # gather one-hots (edge rows on sublanes, node index on lanes)
    niota = lax.broadcasted_iota(jnp.int32, (n_edges, n_nodes), 1)
    row1h = (niota == rowi).astype(jnp.float32)        # (E, N)
    col1h = (niota == coli).astype(jnp.float32)        # (E, N)

    # fused endpoint gather: ONE matmul per endpoint fetches scalar + vector features
    g_row = dot(row1h, node)                           # (E, 28)
    g_col = dot(col1h, node)                           # (E, 28)

    # hoisted frame-column broadcasts, reused by both sub-layers
    frb = [jnp.broadcast_to(fr[:, k:k + 1], (n_edges, HID0)) for k in range(9)]

    # ---------------- message_fusion[0]: (S_MSG, V_MSG) -> (S_OUT, V_OUT) ----------
    msg_v = jnp.concatenate([g_row[:, S_IN:], ev, g_col[:, S_IN:]], axis=1)   # (E, 30) ch-major
    vh = dot(msg_v, W('wd0'))                          # (E, 3*HID0) coord-major
    vx, vy, vz = vh[:, 0:HID0], vh[:, HID0:2 * HID0], vh[:, 2 * HID0:3 * HID0]
    vnorm = jnp.sqrt(vx * vx + vy * vy + vz * vz + 1e-8)
    p0 = frb[0] * vx + frb[1] * vy + frb[2] * vz
    p1 = frb[3] * vx + frb[4] * vy + frb[5] * vz
    p2 = frb[6] * vx + frb[7] * vy + frb[8] * vz
    # single K-stacked matmul: [s_row | es | s_col | vnorm | p0 | p1 | p2] (E, 80)
    msg_s = jnp.concatenate([g_row[:, 0:S_IN], es, g_col[:, 0:S_IN],
                             vnorm, p0, p1, p2], axis=1)
    sg0 = dot(msg_s, W('wf0')) + W('bf0')              # (E, 28) = [s_pre | gate_pre x3]
    s1 = jax.nn.silu(sg0[:, 0:S_OUT])
    gate0 = jax.nn.sigmoid(sg0[:, S_OUT:])             # (E, 12) already channel-interleaved
    v1 = dot(vh, W('wu0')) * gate0                     # (E, 12) channel-major

    # ---------------- message_fusion[1]: (S_OUT, V_OUT) -> (S_OUT, V_OUT) ----------
    vh1 = dot(v1, W('wd1'))                            # (E, 3*HID1) coord-major
    ux, uy, uz = vh1[:, 0:HID1], vh1[:, HID1:2 * HID1], vh1[:, 2 * HID1:3 * HID1]
    vnorm1 = jnp.sqrt(ux * ux + uy * uy + uz * uz + 1e-8)
    q0 = frb[0][:, :HID1] * ux + frb[1][:, :HID1] * uy + frb[2][:, :HID1] * uz
    q1 = frb[3][:, :HID1] * ux + frb[4][:, :HID1] * uy + frb[5][:, :HID1] * uz
    q2 = frb[6][:, :HID1] * ux + frb[7][:, :HID1] * uy + frb[8][:, :HID1] * uz
    msg_s1 = jnp.concatenate([s1, vnorm1, q0, q1, q2], axis=1)     # (E, 32)
    sg1 = dot(msg_s1, W('wf1')) + W('bf1')
    s2 = jax.nn.silu(sg1[:, 0:S_OUT])
    gate1 = jax.nn.sigmoid(sg1[:, S_OUT:])
    v2 = dot(vh1, W('wu1')) * gate1                    # (E, 12) channel-major

    # residual message fusion (use_residual_message_gcp = True, num_message_layers = 2)
    s_res = s1 + s2
    v_res = v1 + v2

    # scalar message attention: sigmoid(Linear(S_OUT -> 1)) on the VPU (mul + lane reduce)
    wa = W('attn')
    attn = jax.nn.sigmoid(jnp.sum(s_res * wa[:, 0:S_OUT], axis=-1, keepdims=True)
                          + wa[:, S_OUT:S_OUT + 1])
    msg_out = jnp.concatenate([s_res * attn, v_res], axis=1)       # (E, 28)

    # scatter-"sum" over destination (row) nodes: transposed one-hot built directly
    # (node index on sublanes, edge index on lanes) -> one standard MXU matmul.
    eiota = lax.broadcasted_iota(jnp.int32, (n_nodes, n_edges), 0)
    scat1h = (eiota == rowlane_ref[...].astype(jnp.int32)).astype(jnp.float32)  # (N, E)
    out_ref[...] = dot(scat1h, msg_out)                # (N, 28)


# ---------------- JAX wrapper (input packing + pallas_call, no transposes) ----------
def gcp_message_passing_forward(node_s, node_v, edge_s, edge_v, edge_index, frames, wp):
    N = node_s.shape[0]
    E = edge_s.shape[0]

    rowf = edge_index[0].astype(jnp.float32)
    colf = edge_index[1].astype(jnp.float32)

    # 3 packed inputs + 1 tiny lane-oriented index vector -> 4 input DMAs, 1 output DMA
    node_buf = jnp.concatenate([node_s, node_v.reshape(N, V_IN * 3)], axis=1).astype(jnp.float32)
    edge_buf = jnp.concatenate([edge_s, edge_v.reshape(E, E_V * 3), frames.reshape(E, 9),
                                rowf[:, None], colf[:, None]], axis=1).astype(jnp.float32)
    row_lanes = rowf[None, :]                                       # (1, E)

    out = pl.pallas_call(
        gcp_mp_kernel,
        out_shape=jax.ShapeDtypeStruct((N, S_OUT + 3 * V_OUT), jnp.float32),
        # no grid / BlockSpecs: whole arrays mapped straight into VMEM, no pipeline
        # scaffolding or double-buffering for this fixed-overhead-bound problem size.
    )(node_buf, edge_buf, row_lanes, wp)

    out_s = out[:, :S_OUT]
    out_v = out[:, S_OUT:].reshape(N, V_OUT, 3)         # channel-major -> free reshape
    return out_s, out_v


# ---------------- pure-JAX reference (concat-based, unpacked weights) ---------------
def _gcp_layer(s, v_cm, fr, v_in, wd, ws, bs, wu, wg, bg):
    vh = [jnp.dot(v_cm[:, c * v_in:(c + 1) * v_in], wd,
                  preferred_element_type=jnp.float32) for c in range(3)]
    vnorm = jnp.sqrt(vh[0] * vh[0] + vh[1] * vh[1] + vh[2] * vh[2] + 1e-8)
    projs = []
    for k in range(3):
        p = fr[:, k * 3 + 0:k * 3 + 1] * vh[0]
        p = p + fr[:, k * 3 + 1:k * 3 + 2] * vh[1]
        p = p + fr[:, k * 3 + 2:k * 3 + 3] * vh[2]
        projs.append(p)
    merged = jnp.concatenate([s, vnorm] + projs, axis=-1)
    s_pre = jnp.dot(merged, ws, preferred_element_type=jnp.float32) + bs
    s_out = jax.nn.silu(s_pre)
    vu = [jnp.dot(h, wu, preferred_element_type=jnp.float32) for h in vh]
    gate = jax.nn.sigmoid(jnp.dot(s_pre, wg, preferred_element_type=jnp.float32) + bg)
    v_out = jnp.concatenate([u * gate for u in vu], axis=-1)
    return s_out, v_out


def reference_forward(node_s, node_v, edge_s, edge_v, edge_index, frames, P):
    row, col = edge_index[0], edge_index[1]
    ms = jnp.concatenate([node_s[row], edge_s, node_s[col]], axis=-1)
    mv = jnp.concatenate([node_v[row], edge_v, node_v[col]], axis=1)
    mv_cm = jnp.transpose(mv, (0, 2, 1)).reshape(N_EDGES, 3 * V_MSG)
    fr9 = frames.reshape(N_EDGES, 9)
    s1, v1 = _gcp_layer(ms, mv_cm, fr9, V_MSG,
                        P['wd0'], P['ws0'], P['bs0'], P['wu0'], P['wg0'], P['bg0'])
    s2, v2 = _gcp_layer(s1, v1, fr9, V_OUT,
                        P['wd1'], P['ws1'], P['bs1'], P['wu1'], P['wg1'], P['bg1'])
    s_res, v_res = s1 + s2, v1 + v2
    attn = jax.nn.sigmoid(s_res @ P['wa'] + P['ba'])
    msg = jnp.concatenate([s_res * attn, v_res], axis=-1)
    agg = jax.ops.segment_sum(msg, row, num_segments=N_NODES)
    return agg[:, :S_OUT], jnp.transpose(agg[:, S_OUT:].reshape(N_NODES, 3, V_OUT), (0, 2, 1))


if __name__ == "__main__":
    key = jax.random.PRNGKey(0)
    ks = jax.random.split(key, 20)

    node_s = jax.random.normal(ks[0], (N_NODES, S_IN), jnp.float32)
    node_v = jax.random.normal(ks[1], (N_NODES, V_IN, 3), jnp.float32)
    edge_s = jax.random.normal(ks[2], (N_EDGES, E_S), jnp.float32)
    edge_v = jax.random.normal(ks[3], (N_EDGES, E_V, 3), jnp.float32)
    edge_index = jax.random.randint(ks[4], (2, N_EDGES), 0, N_NODES)
    frames = jax.random.normal(ks[5], (N_EDGES, 3, 3), jnp.float32)

    def init(k, shape):
        return jax.random.normal(k, shape, jnp.float32) / jnp.sqrt(float(shape[0]))

    P = {
        # message_fusion[0]: (S_MSG, V_MSG) -> (S_OUT, V_OUT), hidden = HID0
        'wd0': init(ks[6], (V_MSG, HID0)),
        'ws0': init(ks[7], (S_MSG + 4 * HID0, S_OUT)),
        'bs0': 0.01 * jnp.ones((1, S_OUT), jnp.float32),
        'wu0': init(ks[8], (HID0, V_OUT)),
        'wg0': init(ks[9], (S_OUT, V_OUT)),
        'bg0': jnp.zeros((1, V_OUT), jnp.float32),
        # message_fusion[1]: (S_OUT, V_OUT) -> (S_OUT, V_OUT), hidden = HID1
        'wd1': init(ks[10], (V_OUT, HID1)),
        'ws1': init(ks[11], (S_OUT + 4 * HID1, S_OUT)),
        'bs1': 0.01 * jnp.ones((1, S_OUT), jnp.float32),
        'wu1': init(ks[12], (HID1, V_OUT)),
        'wg1': init(ks[13], (S_OUT, V_OUT)),
        'bg1': jnp.zeros((1, V_OUT), jnp.float32),
        # scalar_message_attention: Linear(S_OUT, 1) + Sigmoid
        'wa': init(ks[14], (S_OUT, 1)),
        'ba': jnp.zeros((1, 1), jnp.float32),
    }

    wp = pack_params(P)   # one-time weight packing (outside the jitted step)

    fwd = jax.jit(gcp_message_passing_forward)
    out_s, out_v = fwd(node_s, node_v, edge_s, edge_v, edge_index, frames, wp)
    (out_s, out_v) = jax.block_until_ready((out_s, out_v))

    ref_s, ref_v = reference_forward(node_s, node_v, edge_s, edge_v, edge_index, frames, P)
    assert out_s.shape == (N_NODES, S_OUT) and out_v.shape == (N_NODES, V_OUT, 3)
    assert jnp.allclose(out_s, ref_s, rtol=1e-3, atol=1e-3)
    assert jnp.allclose(out_v, ref_v, rtol=1e-3, atol=1e-3)

    print("KERNEL_OK")
</pallas_src>

<mosaic_0001>
module attributes {stable_mosaic.version = 11 : i64} {
  func.func @gcp_mp_kernel(%arg0: memref<8x28xf32, #tpu.memory_space<vmem>>, %arg1: memref<32x25xf32, #tpu.memory_space<vmem>>, %arg2: memref<1x32xf32, #tpu.memory_space<vmem>>, %arg3: memref<232x32xf32, #tpu.memory_space<vmem>>, %arg4: memref<8x28xf32, #tpu.memory_space<vmem>>) attributes {dimension_semantics = [], scalar_prefetch = 0 : i64, scratch_operands = 0 : i64, tpu.core_type = #tpu.core_type<tc>} {
    %c0 = arith.constant 0 : index
    %c0_0 = arith.constant 0 : index
    %0 = vector.load %arg0[%c0, %c0_0] : memref<8x28xf32, #tpu.memory_space<vmem>>, vector<8x28xf32>
    %c0_1 = arith.constant 0 : index
    %c0_2 = arith.constant 0 : index
    %1 = vector.load %arg1[%c0_1, %c0_2] : memref<32x25xf32, #tpu.memory_space<vmem>>, vector<32x25xf32>
    %2 = vector.extract_strided_slice %1 {offsets = [0, 0], sizes = [32, 8], strides = [1, 1]} : vector<32x25xf32> to vector<32x8xf32>
    %3 = vector.extract_strided_slice %1 {offsets = [0, 8], sizes = [32, 6], strides = [1, 1]} : vector<32x25xf32> to vector<32x6xf32>
    %4 = vector.extract_strided_slice %1 {offsets = [0, 14], sizes = [32, 9], strides = [1, 1]} : vector<32x25xf32> to vector<32x9xf32>
    %5 = vector.extract_strided_slice %1 {offsets = [0, 23], sizes = [32, 1], strides = [1, 1]} : vector<32x25xf32> to vector<32x1xf32>
    %6 = arith.fptosi %5 : vector<32x1xf32> to vector<32x1xi32>
    %7 = vector.extract_strided_slice %1 {offsets = [0, 24], sizes = [32, 1], strides = [1, 1]} : vector<32x25xf32> to vector<32x1xf32>
    %8 = arith.fptosi %7 : vector<32x1xf32> to vector<32x1xi32>
    %9 = tpu.iota {dimensions = array<i32: 1>} : vector<32x8xi32>
    %10 = vector.broadcast %6 : vector<32x1xi32> to vector<32x8xi32>
    %11 = arith.cmpi eq, %9, %10 : vector<32x8xi32>
    %12 = arith.extui %11 : vector<32x8xi1> to vector<32x8xi32>
    %13 = arith.sitofp %12 : vector<32x8xi32> to vector<32x8xf32>
    %14 = vector.broadcast %8 : vector<32x1xi32> to vector<32x8xi32>
    %15 = arith.cmpi eq, %9, %14 : vector<32x8xi32>
    %16 = arith.extui %15 : vector<32x8xi1> to vector<32x8xi32>
    %17 = arith.sitofp %16 : vector<32x8xi32> to vector<32x8xf32>
    %cst = arith.constant dense<0.000000e+00> : vector<32x28xf32>
    %18 = tpu.matmul %13, %0, %cst {dimension_numbers = #tpu.dot_dimension_numbers<[1], [0], [0], [1], [0, 0, 1, 1], [], []>} : vector<32x8xf32>, vector<8x28xf32>, vector<32x28xf32> -> vector<32x28xf32>
    %cst_3 = arith.constant dense<0.000000e+00> : vector<32x28xf32>
    %19 = tpu.matmul %17, %0, %cst_3 {dimension_numbers = #tpu.dot_dimension_numbers<[1], [0], [0], [1], [0, 0, 1, 1], [], []>} : vector<32x8xf32>, vector<8x28xf32>, vector<32x28xf32> -> vector<32x28xf32>
    %20 = vector.extract_strided_slice %4 {offsets = [0, 0], sizes = [32, 1], strides = [1, 1]} : vector<32x9xf32> to vector<32x1xf32>
    %21 = vector.shape_cast %20 : vector<32x1xf32> to vector<32x1xf32>
    %22 = vector.broadcast %21 : vector<32x1xf32> to vector<32x10xf32>
    %23 = vector.extract_strided_slice %4 {offsets = [0, 1], sizes = [32, 1], strides = [1, 1]} : vector<32x9xf32> to vector<32x1xf32>
    %24 = vector.shape_cast %23 : vector<32x1xf32> to vector<32x1xf32>
    %25 = vector.broadcast %24 : vector<32x1xf32> to vector<32x10xf32>
    %26 = vector.extract_strided_slice %4 {offsets = [0, 2], sizes = [32, 1], strides = [1, 1]} : vector<32x9xf32> to vector<32x1xf32>
    %27 = vector.shape_cast %26 : vector<32x1xf32> to vector<32x1xf32>
    %28 = vector.broadcast %27 : vector<32x1xf32> to vector<32x10xf32>
    %29 = vector.extract_strided_slice %4 {offsets = [0, 3], sizes = [32, 1], strides = [1, 1]} : vector<32x9xf32> to vector<32x1xf32>
    %30 = vector.shape_cast %29 : vector<32x1xf32> to vector<32x1xf32>
    %31 = vector.broadcast %30 : vector<32x1xf32> to vector<32x10xf32>
    %32 = vector.extract_strided_slice %4 {offsets = [0, 4], sizes = [32, 1], strides = [1, 1]} : vector<32x9xf32> to vector<32x1xf32>
    %33 = vector.shape_cast %32 : vector<32x1xf32> to vector<32x1xf32>
    %34 = vector.broadcast %33 : vector<32x1xf32> to vector<32x10xf32>
    %35 = vector.extract_strided_slice %4 {offsets = [0, 5], sizes = [32, 1], strides = [1, 1]} : vector<32x9xf32> to vector<32x1xf32>
    %36 = vector.shape_cast %35 : vector<32x1xf32> to vector<32x1xf32>
    %37 = vector.broadcast %36 : vector<32x1xf32> to vector<32x10xf32>
    %38 = vector.extract_strided_slice %4 {offsets = [0, 6], sizes = [32, 1], strides = [1, 1]} : vector<32x9xf32> to vector<32x1xf32>
    %39 = vector.shape_cast %38 : vector<32x1xf32> to vector<32x1xf32>
    %40 = vector.broadcast %39 : vector<32x1xf32> to vector<32x10xf32>
    %41 = vector.extract_strided_slice %4 {offsets = [0, 7], sizes = [32, 1], strides = [1, 1]} : vector<32x9xf32> to vector<32x1xf32>
    %42 = vector.shape_cast %41 : vector<32x1xf32> to vector<32x1xf32>
    %43 = vector.broadcast %42 : vector<32x1xf32> to vector<32x10xf32>
    %44 = vector.extract_strided_slice %4 {offsets = [0, 8], sizes = [32, 1], strides = [1, 1]} : vector<32x9xf32> to vector<32x1xf32>
    %45 = vector.shape_cast %44 : vector<32x1xf32> to vector<32x1xf32>
    %46 = vector.broadcast %45 : vector<32x1xf32> to vector<32x10xf32>
    %47 = vector.extract_strided_slice %18 {offsets = [0, 16], sizes = [32, 12], strides = [1, 1]} : vector<32x28xf32> to vector<32x12xf32>
    %48 = vector.extract_strided_slice %19 {offsets = [0, 16], sizes = [32, 12], strides = [1, 1]} : vector<32x28xf32> to vector<32x12xf32>
    %49 = tpu.concatenate %47, %3, %48 in 1 : vector<32x12xf32>, vector<32x6xf32>, vector<32x12xf32> -> vector<32x30xf32>
    %c0_4 = arith.constant 0 : index
    %c0_5 = arith.constant 0 : index
    %50 = vector.load %arg3[%c0_4, %c0_5] : memref<232x32xf32, #tpu.memory_space<vmem>>, vector<30x30xf32>
    %cst_6 = arith.constant dense<0.000000e+00> : vector<32x30xf32>
    %51 = tpu.matmul %49, %50, %cst_6 {dimension_numbers = #tpu.dot_dimension_numbers<[1], [0], [0], [1], [0, 0, 1, 1], [], []>} : vector<32x30xf32>, vector<30x30xf32>, vector<32x30xf32> -> vector<32x30xf32>
    %52 = vector.extract_strided_slice %51 {offsets = [0, 0], sizes = [32, 10], strides = [1, 1]} : vector<32x30xf32> to vector<32x10xf32>
    %53 = vector.extract_strided_slice %51 {offsets = [0, 10], sizes = [32, 10], strides = [1, 1]} : vector<32x30xf32> to vector<32x10xf32>
    %54 = vector.extract_strided_slice %51 {offsets = [0, 20], sizes = [32, 10], strides = [1, 1]} : vector<32x30xf32> to vector<32x10xf32>
    %55 = arith.mulf %52, %52 : vector<32x10xf32>
    %56 = arith.mulf %53, %53 : vector<32x10xf32>
    %57 = arith.addf %55, %56 : vector<32x10xf32>
    %58 = arith.mulf %54, %54 : vector<32x10xf32>
    %59 = arith.addf %57, %58 : vector<32x10xf32>
    %cst_7 = arith.constant 9.99999993E-9 : f32
    %60 = vector.broadcast %cst_7 : f32 to vector<32x10xf32>
    %61 = arith.addf %59, %60 : vector<32x10xf32>
    %62 = math.sqrt %61 : vector<32x10xf32>
    %63 = arith.mulf %22, %52 : vector<32x10xf32>
    %64 = arith.mulf %25, %53 : vector<32x10xf32>
    %65 = arith.addf %63, %64 : vector<32x10xf32>
    %66 = arith.mulf %28, %54 : vector<32x10xf32>
    %67 = arith.addf %65, %66 : vector<32x10xf32>
    %68 = arith.mulf %31, %52 : vector<32x10xf32>
    %69 = arith.mulf %34, %53 : vector<32x10xf32>
    %70 = arith.addf %68, %69 : vector<32x10xf32>
    %71 = arith.mulf %37, %54 : vector<32x10xf32>
    %72 = arith.addf %70, %71 : vector<32x10xf32>
    %73 = arith.mulf %40, %52 : vector<32x10xf32>
    %74 = arith.mulf %43, %53 : vector<32x10xf32>
    %75 = arith.addf %73, %74 : vector<32x10xf32>
    %76 = arith.mulf %46, %54 : vector<32x10xf32>
    %77 = arith.addf %75, %76 : vector<32x10xf32>
    %78 = vector.extract_strided_slice %18 {offsets = [0, 0], sizes = [32, 16], strides = [1, 1]} : vector<32x28xf32> to vector<32x16xf32>
    %79 = vector.extract_strided_slice %19 {offsets = [0, 0], sizes = [32, 16], strides = [1, 1]} : vector<32x28xf32> to vector<32x16xf32>
    %80 = tpu.concatenate %78, %2, %79, %62, %67, %72, %77 in 1 : vector<32x16xf32>, vector<32x8xf32>, vector<32x16xf32>, vector<32x10xf32>, vector<32x10xf32>, vector<32x10xf32>, vector<32x10xf32> -> vector<32x80xf32>
    %c32 = arith.constant 32 : index
    %c0_8 = arith.constant 0 : index
    %81 = vector.load %arg3[%c32, %c0_8] : memref<232x32xf32, #tpu.memory_space<vmem>>, vector<80x28xf32>
    %cst_9 = arith.constant dense<0.000000e+00> : vector<32x28xf32>
    %82 = tpu.matmul %80, %81, %cst_9 {dimension_numbers = #tpu.dot_dimension_numbers<[1], [0], [0], [1], [0, 0, 1, 1], [], []>} : vector<32x80xf32>, vector<80x28xf32>, vector<32x28xf32> -> vector<32x28xf32>
    %c112 = arith.constant 112 : index
    %c0_10 = arith.constant 0 : index
    %83 = vector.load %arg3[%c112, %c0_10] : memref<232x32xf32, #tpu.memory_space<vmem>>, vector<1x28xf32>
    %84 = vector.broadcast %83 : vector<1x28xf32> to vector<32x28xf32>
    %85 = arith.addf %82, %84 : vector<32x28xf32>
    %86 = vector.extract_strided_slice %85 {offsets = [0, 0], sizes = [32, 16], strides = [1, 1]} : vector<32x28xf32> to vector<32x16xf32>
    %87 = arith.negf %86 : vector<32x16xf32>
    %88 = math.exp %87 : vector<32x16xf32>
    %cst_11 = arith.constant 1.000000e+00 : f32
    %89 = vector.broadcast %cst_11 : f32 to vector<32x16xf32>
    %90 = arith.addf %89, %88 : vector<32x16xf32>
    %91 = arith.divf %89, %90 : vector<32x16xf32>
    %92 = arith.mulf %86, %91 : vector<32x16xf32>
    %93 = vector.extract_strided_slice %85 {offsets = [0, 16], sizes = [32, 12], strides = [1, 1]} : vector<32x28xf32> to vector<32x12xf32>
    %94 = arith.negf %93 : vector<32x12xf32>
    %95 = math.exp %94 : vector<32x12xf32>
    %cst_12 = arith.constant 1.000000e+00 : f32
    %96 = vector.broadcast %cst_12 : f32 to vector<32x12xf32>
    %97 = arith.addf %96, %95 : vector<32x12xf32>
    %98 = arith.divf %96, %97 : vector<32x12xf32>
    %c120 = arith.constant 120 : index
    %c0_13 = arith.constant 0 : index
    %99 = vector.load %arg3[%c120, %c0_13] : memref<232x32xf32, #tpu.memory_space<vmem>>, vector<30x12xf32>
    %cst_14 = arith.constant dense<0.000000e+00> : vector<32x12xf32>
    %100 = tpu.matmul %51, %99, %cst_14 {dimension_numbers = #tpu.dot_dimension_numbers<[1], [0], [0], [1], [0, 0, 1, 1], [], []>} : vector<32x30xf32>, vector<30x12xf32>, vector<32x12xf32> -> vector<32x12xf32>
    %101 = arith.mulf %100, %98 : vector<32x12xf32>
    %c152 = arith.constant 152 : index
    %c0_15 = arith.constant 0 : index
    %102 = vector.load %arg3[%c152, %c0_15] : memref<232x32xf32, #tpu.memory_space<vmem>>, vector<12x12xf32>
    %cst_16 = arith.constant dense<0.000000e+00> : vector<32x12xf32>
    %103 = tpu.matmul %101, %102, %cst_16 {dimension_numbers = #tpu.dot_dimension_numbers<[1], [0], [0], [1], [0, 0, 1, 1], [], []>} : vector<32x12xf32>, vector<12x12xf32>, vector<32x12xf32> -> vector<32x12xf32>
    %104 = vector.extract_strided_slice %103 {offsets = [0, 0], sizes = [32, 4], strides = [1, 1]} : vector<32x12xf32> to vector<32x4xf32>
    %105 = vector.extract_strided_slice %103 {offsets = [0, 4], sizes = [32, 4], strides = [1, 1]} : vector<32x12xf32> to vector<32x4xf32>
    %106 = vector.extract_strided_slice %103 {offsets = [0, 8], sizes = [32, 4], strides = [1, 1]} : vector<32x12xf32> to vector<32x4xf32>
    %107 = arith.mulf %104, %104 : vector<32x4xf32>
    %108 = arith.mulf %105, %105 : vector<32x4xf32>
    %109 = arith.addf %107, %108 : vector<32x4xf32>
    %110 = arith.mulf %106, %106 : vector<32x4xf32>
    %111 = arith.addf %109, %110 : vector<32x4xf32>
    %cst_17 = arith.constant 9.99999993E-9 : f32
    %112 = vector.broadcast %cst_17 : f32 to vector<32x4xf32>
    %113 = arith.addf %111, %112 : vector<32x4xf32>
    %114 = math.sqrt %113 : vector<32x4xf32>
    %115 = vector.extract_strided_slice %22 {offsets = [0, 0], sizes = [32, 4], strides = [1, 1]} : vector<32x10xf32> to vector<32x4xf32>
    %116 = arith.mulf %115, %104 : vector<32x4xf32>
    %117 = vector.extract_strided_slice %25 {offsets = [0, 0], sizes = [32, 4], strides = [1, 1]} : vector<32x10xf32> to vector<32x4xf32>
    %118 = arith.mulf %117, %105 : vector<32x4xf32>
    %119 = arith.addf %116, %118 : vector<32x4xf32>
    %120 = vector.extract_strided_slice %28 {offsets = [0, 0], sizes = [32, 4], strides = [1, 1]} : vector<32x10xf32> to vector<32x4xf32>
    %121 = arith.mulf %120, %106 : vector<32x4xf32>
    %122 = arith.addf %119, %121 : vector<32x4xf32>
    %123 = vector.extract_strided_slice %31 {offsets = [0, 0], sizes = [32, 4], strides = [1, 1]} : vector<32x10xf32> to vector<32x4xf32>
    %124 = arith.mulf %123, %104 : vector<32x4xf32>
    %125 = vector.extract_strided_slice %34 {offsets = [0, 0], sizes = [32, 4], strides = [1, 1]} : vector<32x10xf32> to vector<32x4xf32>
    %126 = arith.mulf %125, %105 : vector<32x4xf32>
    %127 = arith.addf %124, %126 : vector<32x4xf32>
    %128 = vector.extract_strided_slice %37 {offsets = [0, 0], sizes = [32, 4], strides = [1, 1]} : vector<32x10xf32> to vector<32x4xf32>
    %129 = arith.mulf %128, %106 : vector<32x4xf32>
    %130 = arith.addf %127, %129 : vector<32x4xf32>
    %131 = vector.extract_strided_slice %40 {offsets = [0, 0], sizes = [32, 4], strides = [1, 1]} : vector<32x10xf32> to vector<32x4xf32>
    %132 = arith.mulf %131, %104 : vector<32x4xf32>
    %133 = vector.extract_strided_slice %43 {offsets = [0, 0], sizes = [32, 4], strides = [1, 1]} : vector<32x10xf32> to vector<32x4xf32>
    %134 = arith.mulf %133, %105 : vector<32x4xf32>
    %135 = arith.addf %132, %134 : vector<32x4xf32>
    %136 = vector.extract_strided_slice %46 {offsets = [0, 0], sizes = [32, 4], strides = [1, 1]} : vector<32x10xf32> to vector<32x4xf32>
    %137 = arith.mulf %136, %106 : vector<32x4xf32>
    %138 = arith.addf %135, %137 : vector<32x4xf32>
    %139 = tpu.concatenate %92, %114, %122, %130, %138 in 1 : vector<32x16xf32>, vector<32x4xf32>, vector<32x4xf32>, vector<32x4xf32>, vector<32x4xf32> -> vector<32x32xf32>
    %c168 = arith.constant 168 : index
    %c0_18 = arith.constant 0 : index
    %140 = vector.load %arg3[%c168, %c0_18] : memref<232x32xf32, #tpu.memory_space<vmem>>, vector<32x28xf32>
    %cst_19 = arith.constant dense<0.000000e+00> : vector<32x28xf32>
    %141 = tpu.matmul %139, %140, %cst_19 {dimension_numbers = #tpu.dot_dimension_numbers<[1], [0], [0], [1], [0, 0, 1, 1], [], []>} : vector<32x32xf32>, vector<32x28xf32>, vector<32x28xf32> -> vector<32x28xf32>
    %c200 = arith.constant 200 : index
    %c0_20 = arith.constant 0 : index
    %142 = vector.load %arg3[%c200, %c0_20] : memref<232x32xf32, #tpu.memory_space<vmem>>, vector<1x28xf32>
    %143 = vector.broadcast %142 : vector<1x28xf32> to vector<32x28xf32>
    %144 = arith.addf %141, %143 : vector<32x28xf32>
    %145 = vector.extract_strided_slice %144 {offsets = [0, 0], sizes = [32, 16], strides = [1, 1]} : vector<32x28xf32> to vector<32x16xf32>
    %146 = arith.negf %145 : vector<32x16xf32>
    %147 = math.exp %146 : vector<32x16xf32>
    %cst_21 = arith.constant 1.000000e+00 : f32
    %148 = vector.broadcast %cst_21 : f32 to vector<32x16xf32>
    %149 = arith.addf %148, %147 : vector<32x16xf32>
    %150 = arith.divf %148, %149 : vector<32x16xf32>
    %151 = arith.mulf %145, %150 : vector<32x16xf32>
    %152 = vector.extract_strided_slice %144 {offsets = [0, 16], sizes = [32, 12], strides = [1, 1]} : vector<32x28xf32> to vector<32x12xf32>
    %153 = arith.negf %152 : vector<32x12xf32>
    %154 = math.exp %153 : vector<32x12xf32>
    %cst_22 = arith.constant 1.000000e+00 : f32
    %155 = vector.broadcast %cst_22 : f32 to vector<32x12xf32>
    %156 = arith.addf %155, %154 : vector<32x12xf32>
    %157 = arith.divf %155, %156 : vector<32x12xf32>
    %c208 = arith.constant 208 : index
    %c0_23 = arith.constant 0 : index
    %158 = vector.load %arg3[%c208, %c0_23] : memref<232x32xf32, #tpu.memory_space<vmem>>, vector<12x12xf32>
    %cst_24 = arith.constant dense<0.000000e+00> : vector<32x12xf32>
    %159 = tpu.matmul %103, %158, %cst_24 {dimension_numbers = #tpu.dot_dimension_numbers<[1], [0], [0], [1], [0, 0, 1, 1], [], []>} : vector<32x12xf32>, vector<12x12xf32>, vector<32x12xf32> -> vector<32x12xf32>
    %160 = arith.mulf %159, %157 : vector<32x12xf32>
    %161 = arith.addf %92, %151 : vector<32x16xf32>
    %162 = arith.addf %101, %160 : vector<32x12xf32>
    %c224 = arith.constant 224 : index
    %c0_25 = arith.constant 0 : index
    %163 = vector.load %arg3[%c224, %c0_25] : memref<232x32xf32, #tpu.memory_space<vmem>>, vector<1x17xf32>
    %164 = vector.extract_strided_slice %163 {offsets = [0, 0], sizes = [1, 16], strides = [1, 1]} : vector<1x17xf32> to vector<1x16xf32>
    %165 = vector.broadcast %164 : vector<1x16xf32> to vector<32x16xf32>
    %166 = arith.mulf %161, %165 : vector<32x16xf32>
    %cst_26 = arith.constant dense<0.000000e+00> : vector<32xf32>
    %167 = vector.multi_reduction <add>, %166, %cst_26 [1] : vector<32x16xf32> to vector<32xf32>
    %168 = vector.shape_cast %167 : vector<32xf32> to vector<32x1xf32>
    %169 = vector.extract_strided_slice %163 {offsets = [0, 16], sizes = [1, 1], strides = [1, 1]} : vector<1x17xf32> to vector<1x1xf32>
    %170 = vector.broadcast %169 : vector<1x1xf32> to vector<32x1xf32>
    %171 = arith.addf %168, %170 : vector<32x1xf32>
    %172 = arith.negf %171 : vector<32x1xf32>
    %173 = math.exp %172 : vector<32x1xf32>
    %cst_27 = arith.constant 1.000000e+00 : f32
    %174 = vector.broadcast %cst_27 : f32 to vector<32x1xf32>
    %175 = arith.addf %174, %173 : vector<32x1xf32>
    %176 = arith.divf %174, %175 : vector<32x1xf32>
    %177 = vector.broadcast %176 : vector<32x1xf32> to vector<32x16xf32>
    %178 = arith.mulf %161, %177 : vector<32x16xf32>
    %179 = tpu.concatenate %178, %162 in 1 : vector<32x16xf32>, vector<32x12xf32> -> vector<32x28xf32>
    %180 = tpu.iota {dimensions = array<i32: 0>} : vector<8x32xi32>
    %c0_28 = arith.constant 0 : index
    %c0_29 = arith.constant 0 : index
    %181 = vector.load %arg2[%c0_28, %c0_29] : memref<1x32xf32, #tpu.memory_space<vmem>>, vector<1x32xf32>
    %182 = arith.fptosi %181 : vector<1x32xf32> to vector<1x32xi32>
    %183 = vector.broadcast %182 : vector<1x32xi32> to vector<8x32xi32>
    %184 = arith.cmpi eq, %180, %183 : vector<8x32xi32>
    %185 = arith.extui %184 : vector<8x32xi1> to vector<8x32xi32>
    %186 = arith.sitofp %185 : vector<8x32xi32> to vector<8x32xf32>
    %cst_30 = arith.constant dense<0.000000e+00> : vector<8x28xf32>
    %187 = tpu.matmul %186, %179, %cst_30 {dimension_numbers = #tpu.dot_dimension_numbers<[1], [0], [0], [1], [0, 0, 1, 1], [], []>} : vector<8x32xf32>, vector<32x28xf32>, vector<8x28xf32> -> vector<8x28xf32>
    %c0_31 = arith.constant 0 : index
    %c0_32 = arith.constant 0 : index
    %188 = vector.load %arg4[%c0_31, %c0_32] : memref<8x28xf32, #tpu.memory_space<vmem>>, vector<8x28xf32>
    tpu.vector_store %arg4[%c0_31, %c0_32], %187 {strides = array<i32>} : memref<8x28xf32, #tpu.memory_space<vmem>>, vector<8x28xf32>,
    return
  }
}

</mosaic_0001>

<bundles_post_ra>
// kernel: gcp_message_passing_forward.1
= control target key start
LH: loop header
LB: loop body
LE: loop exit
PB: predicated region body
PF: predicated region fallthrough
CT: control target
= control target key end

     0   :  { %v2506_v0 = vmov 23   ;;  %v2507_v1 = vmov 24   ;;  %v3464_v15 = vlaneseq  ;;  %vm76_vm0 = vcmask 64512   ;;  %s2513_s6 = smov 112   ;;  %s2514_s7 = smov 2   ;;  %s3459_s1 = inlined_call_operand.vmem [shape: f32[32,25], index: 1, kind: input, shape index: {}]   ;;  %s3460_s0 = inlined_call_operand.vmem [shape: f32[8,28], index: 0, kind: input, shape index: {}]   ;;  %s3461_s3 = inlined_call_operand.vmem [shape: f32[232,32], index: 3, kind: input, shape index: {}]   ;;  %s3462_s2 = inlined_call_operand.vmem [shape: f32[1,32], index: 2, kind: input, shape index: {}]   ;;  %s3463_s4 = inlined_call_operand.vmem [shape: f32[8,28], index: 4, kind: output, shape index: {}]  }
   0x1   :  { %2397 = vset.pattern.permute.xlu0 %v2506_v0  ;;  %2398 = vset.pattern.permute.xlu1 %v2507_v1  ;;  %v2564_v2 = vld [vmem:[%s3459_s1] sm:$0xff]  ;;  %v2569_v3 = vld [vmem:[%s3459_s1 + $0x8] sm:$0xff]  ;;  %v2576_v6 = vld [vmem:[%s3459_s1 + $0x10] sm:$0xff]  ;;  %v3465_v19 = vmov 0.0   ;;  %v2510_v34 = vmov 15   ;;  %v2511_v40 = vmov 18  }
   0x2   :  { %v2357_v4 = vtrunc.f32 %v2564_v2  ;;  %v2359_v5 = vtrunc.f32 %v2569_v3  ;;  %v2581_v8 = vld [vmem:[%s3459_s1 + $0x18] sm:$0xff]  ;;  %v2361_v10 = vtrunc.f32 %v2576_v6  ;;  %v17_v12 = vld [vmem:[%s3460_s0] sm:$0xff]  ;;  %s2508_s1 = smov 4   ;;  %v27_v16 = vand.u32 127, %v3464_v15  ;;  %v474_v36 = vld [vmem:[%s3461_s3 + $0x8] sm:$0xff]  ;;  %s2522_s16 = smov 118  }
   0x3   :  { %v2363_v11 = vtrunc.f32 %v2581_v8  ;;  %2176 = vmatprep.subr.mxu0 %v17_v12  ;;  %2184 = vmatprep.subr.mxu1 %v17_v12  ;;  %v473_v35 = vld [vmem:[%s3461_s3] sm:$0xff]  ;;  %v475_v38 = vld [vmem:[%s3461_s3 + $0x10] sm:$0xff]  ;;  %v476_v39 = vld [vmem:[%s3461_s3 + $0x18] sm:$0x3f]  ;;  %vm490_vm9 = vcmask 1045504   ;;  %vm2512_vm10 = vmmov 1  }
   0x4   :  { %v2358_v7 = vcvt.f32.s32 %v2357_v4  ;;  %v2360_v9 = vcvt.f32.s32 %v2359_v5  ;;  %v2362_v13 = vcvt.f32.s32 %v2361_v10  ;;  %2177 = vmatpush3.msra.mxu0 %v17_v12  ;;  %2185 = vmatpush3.msra.mxu1 %v17_v12  ;;  %v2291_v37 = vpack.c.bf16 %v474_v36, %v473_v35  ;;  %vm2624_vm11 = vmpackc.low %vm490_vm9, %vm2512_vm10  ;;  %v1066_v60 = vld [vmem:[%s3461_s3 + $0x78] sm:$0xff]  ;;  %v1067_v61 = vld [vmem:[%s3461_s3 + $0x80] sm:$0xff]  ;;  %s2523_s17 = smov 108   ;;  %s2524_s18 = smov 16  }
   0x5   :  { %v2364_v14 = vcvt.f32.s32 %v2363_v11  ;;  %v2295_v41 = vpack.c.bf16 %v476_v39, %v475_v38  ;;  %v2515_v51 = vmov 19   ;;  %v2516_v52 = vmov 16   ;;  %v1068_v5 = vld [vmem:[%s3461_s3 + $0x88] sm:$0xff]  ;;  %s2525_s19 = smov 24   ;;  %s2526_s20 = smov 50  }
   0x6   :  { %29 = vperm.xlu0 %2397, %v2358_v7   ;;  %53 = vperm.xlu1 %2398, %v2358_v7   ;;  %v2517_v53 = vmov 21   ;;  %v2518_v54 = vmov 22   ;;  %v2519_v55 = vmov 14   ;;  %v2520_v56 = vmov 17   ;;  %v1069_v7 = vld [vmem:[%s3461_s3 + $0x90] sm:$0x3f] }
   0x7   :  { %2292 = vmatprep.subr.bf16.mxu0 %v2291_v37  ;;  %v2521_v59 = vmov 20   ;;  %v2321_v62 = vpack.c.bf16 %v1067_v61, %v1066_v60  ;;  %vm463_vm12 = vcmask 97280   ;;  %vm468_vm13 = vcmask 146432   ;;  %s2527_s21 = smov 60   ;;  %s2528_s0 = smov 70  }
   0x8   :  { %vm477_vm14 = vcmask 244736   ;;  %vm900_vm9 = vcmask 195584   ;;  %s2530_s27 = smov 124   ;;  %s2531_s28 = smov 120  }
   0x9   :  { %s2532_s29 = smov 20   ;;  %s2533_s30 = smov 28  }
   0xa   :  { %32 = vperm.xlu0 %2397, %v2360_v9   ;;  %56 = vperm.xlu1 %2398, %v2360_v9  }
   0xe   :  { %35 = vperm.xlu0 %2397, %v2362_v13   ;;  %2399 = vset.pattern.permute.xlu1 %v2506_v0 }
   0xf   :  { %38 = vperm.xlu1 %2399, %v2364_v14  }
  0x12   :  { %2400 = vset.pattern.permute.xlu0 %v2507_v1 }
  0x13   :  { %2401 = vset.pattern.permute.xlu1 %v2507_v1  ;;  %59 = vperm.xlu0 %2400, %v2362_v13  }
  0x14   :  { %62 = vperm.xlu1 %2401, %v2364_v14   ;;  %v2325_v14 = vpack.c.bf16 %v1069_v7, %v1068_v5 }
  0x17   :  { %435 = vrot.lane.b32.xlu0 %v2564_v2, %s2508_s1 }
  0x18   :  { %2402 = vset.pattern.permute.xlu1 %v2510_v34  ;;  %2405 = vset.pattern.permute.xlu0 %v2511_v40 }
  0x1b   :  { %437 = vrot.lane.b32.xlu0 %v2569_v3, %s2508_s1 }
  0x1f   :  { %439 = vrot.lane.b32.xlu0 %v2576_v6, %s2508_s1 }
  0x23   :  { %441 = vrot.lane.b32.xlu0 %v2581_v8, %s2508_s1 }
  0x85   :  { %v30_v17 = vpop.permute.xlu0 %29  ;;  %v54_v18 = vpop.permute.xlu1 %53 }
  0x86   :  { %vm40_vm1 = vcmp.eq.s32.totalorder %v27_v16, %v30_v17  ;;  %vm64_vm2 = vcmp.eq.s32.totalorder %v27_v16, %v54_v18 }
  0x87   :  { %v2050_v20 = vsel %vm40_vm1, 1.0, %v3465_v19  ;;  %v2054_v21 = vsel %vm64_vm2, 1.0, %v3465_v19 }
  0x88   :  { %2178 = vmatprep.mubr.msk.f32.mxu0 %vm76_vm0, %v2050_v20  ;;  %2186 = vmatprep.mubr.msk.f32.mxu1 %vm76_vm0, %v2054_v21 }
  0x89   :  { %v33_v22 = vpop.permute.xlu0 %32  ;;  %v57_v23 = vpop.permute.xlu1 %56 }
  0x8a   :  { %vm41_vm3 = vcmp.eq.s32.totalorder %v27_v16, %v33_v22  ;;  %vm65_vm4 = vcmp.eq.s32.totalorder %v27_v16, %v57_v23 }
  0x8b   :  { %v2051_v24 = vsel %vm41_vm3, 1.0, %v3465_v19  ;;  %v2055_v25 = vsel %vm65_vm4, 1.0, %v3465_v19 }
  0x8c   :  { %2179 = vmatmul.mubr.msk.f32.vlgmr.msra.gmra.mrb[0].mxu0 %vm76_vm0, %v2051_v24  ;;  %2187 = vmatmul.mubr.msk.f32.vlgmr.msra.gmra.mrb[0].mxu1 %vm76_vm0, %v2055_v25 }
  0x8d   :  { %v36_v26 = vpop.permute.xlu0 %35  ;;  %2294 = vmatpush3.bf16.msra.mxu0 %v2291_v37 }
  0x8e   :  { %vm42_vm5 = vcmp.eq.s32.totalorder %v27_v16, %v36_v26  ;;  %v39_v27 = vpop.permute.xlu1 %38  ;;  %2297 = vmatprep.subr.msk.bf16.mxu0 %vm2624_vm11, %v2295_v41 }
  0x8f   :  { %v2052_v28 = vsel %vm42_vm5, 1.0, %v3465_v19  ;;  %vm43_vm6 = vcmp.eq.s32.totalorder %v27_v16, %v39_v27 }
  0x90   :  { %2181 = vmatprep.mubr.msk.f32.mxu0 %vm76_vm0, %v2052_v28  ;;  %v2053_v29 = vsel %vm43_vm6, 1.0, %v3465_v19 }
  0x91   :  { %2182 = vmatmul.mubr.msk.f32.gmra.mrb[2].mxu0 %vm76_vm0, %v2053_v29 }
  0x92   :  { %v60_v30 = vpop.permute.xlu0 %59  ;;  %2300 = vmatpush3.bf16.msk.msra.mxu0 %vm2624_vm11, %v2295_v41 }
  0x93   :  { %vm66_vm7 = vcmp.eq.s32.totalorder %v27_v16, %v60_v30  ;;  %v63_v31 = vpop.permute.xlu1 %62  ;;  %2322 = vmatprep.subr.bf16.mxu0 %v2321_v62 }
  0x94   :  { %v2056_v32 = vsel %vm66_vm7, 1.0, %v3465_v19  ;;  %vm67_vm8 = vcmp.eq.s32.totalorder %v27_v16, %v63_v31  ;;  %vm895_vm7 = vcmask 130048  }
  0x95   :  { %v2057_v33 = vsel %vm67_vm8, 1.0, %v3465_v19  ;;  %2189 = vmatprep.mubr.msk.f32.mxu1 %vm76_vm0, %v2056_v32  ;;  %vm905_vm8 = vcmask 326656  }
  0x96   :  { %2190 = vmatmul.mubr.msk.f32.gmra.mrb[2].mxu1 %vm76_vm0, %v2057_v33  ;;  %v436_v57 = vpop.permute.xlu0 %435 }
  0x9a   :  { %v438_v58 = vpop.permute.xlu0 %437 }
  0x9e   :  { %v440_v63 = vpop.permute.xlu0 %439 }
  0xa2   :  { %v442_v1 = vpop.permute.xlu0 %441 }
 0x15f   :  { %v2632_v43 = vpop.f32.mrb[0].mxu0  ;;  %v2634_v44 = vpop.f32.mrb[0].mxu1 }
 0x160   :  { %425 = vrot.lane.b32.xlu1 %v2632_v43, %s2513_s6  ;;  %v2638_v45 = vpop.f32.mrb[1].mxu0  ;;  %453 = vrot.lane.b32.xlu0 %v2634_v44, %s2514_s7  ;;  %v2641_v46 = vpop.f32.mrb[1].mxu1 }
 0x164   :  { %423 = vrot.lane.b32.xlu1 %v2638_v45, %s2513_s6  ;;  %v2645_v47 = vpop.f32.mrb[2].mxu0 }
 0x165   :  { %v2647_v48 = vpop.f32.mrb[3].mxu0 }
 0x168   :  { %451 = vrot.lane.b32.xlu1 %v2641_v46, %s2514_s7 }
 0x169   :  { %v2650_v49 = vpop.f32.mrb[2].mxu1 }
 0x16a   :  { %457 = vrot.lane.b32.xlu0 %v2650_v49, %s2514_s7  ;;  %v2653_v50 = vpop.f32.mrb[3].mxu1 }
 0x16c   :  { %429 = vrot.lane.b32.xlu1 %v2645_v47, %s2513_s6 }
 0x16e   :  { %344 = vperm.xlu0 %2405, %v2569_v3  }
 0x170   :  { %427 = vrot.lane.b32.xlu1 %v2647_v48, %s2513_s6 }
 0x172   :  { %2408 = vset.pattern.permute.xlu0 %v2515_v51 }
 0x173   :  { %356 = vperm.xlu0 %2408, %v2564_v2  }
 0x174   :  { %455 = vrot.lane.b32.xlu1 %v2653_v50, %s2514_s7 }
 0x177   :  { %360 = vperm.xlu0 %2408, %v2569_v3  }
 0x178   :  { %292 = vperm.xlu1 %2402, %v2564_v2  }
 0x17b   :  { %2411 = vset.pattern.permute.xlu0 %v2510_v34 }
 0x17c   :  { %2403 = vset.pattern.permute.xlu1 %v2511_v40  ;;  %296 = vperm.xlu0 %2411, %v2569_v3  }
 0x17d   :  { %340 = vperm.xlu1 %2403, %v2564_v2  }
 0x180   :  { %304 = vperm.xlu0 %2411, %v2581_v8  }
 0x181   :  { %2404 = vset.pattern.permute.xlu1 %v2516_v52 }
 0x182   :  { %308 = vperm.xlu1 %2404, %v2564_v2  }
 0x184   :  { %2415 = vset.pattern.permute.xlu0 %v2516_v52 }
 0x185   :  { %316 = vperm.xlu0 %2415, %v2576_v6  }
 0x186   :  { %2406 = vset.pattern.permute.xlu1 %v2517_v53 }
 0x187   :  { %388 = vperm.xlu1 %2406, %v2564_v2  }
 0x189   :  { %320 = vperm.xlu0 %2415, %v2581_v8  }
 0x18b   :  { %2407 = vset.pattern.permute.xlu1 %v2516_v52 }
 0x18c   :  { %312 = vperm.xlu1 %2407, %v2569_v3  }
 0x18d   :  { %2419 = vset.pattern.permute.xlu0 %v2517_v53 }
 0x18e   :  { %400 = vperm.xlu0 %2419, %v2581_v8  }
 0x190   :  { %2409 = vset.pattern.permute.xlu1 %v2517_v53 }
 0x191   :  { %392 = vperm.xlu1 %2409, %v2569_v3  }
 0x192   :  { %2421 = vset.pattern.permute.xlu0 %v2518_v54 }
 0x193   :  { %416 = vperm.xlu0 %2421, %v2581_v8  }
 0x195   :  { %2410 = vset.pattern.permute.xlu1 %v2510_v34 }
 0x196   :  { %300 = vperm.xlu1 %2410, %v2576_v6  }
 0x197   :  { %2422 = vset.pattern.permute.xlu0 %v2519_v55 }
 0x198   :  { %273 = vperm.xlu0 %2422, %v2564_v2  }
 0x19a   :  { %2412 = vset.pattern.permute.xlu1 %v2518_v54 }
 0x19b   :  { %404 = vperm.xlu1 %2412, %v2564_v2  }
 0x19c   :  { %283 = vperm.xlu0 %2422, %v2576_v6  }
 0x19f   :  { %2413 = vset.pattern.permute.xlu1 %v2511_v40 }
 0x1a0   :  { %348 = vperm.xlu1 %2413, %v2576_v6   ;;  %2426 = vset.pattern.permute.xlu0 %v2520_v56 }
 0x1a1   :  { %328 = vperm.xlu0 %2426, %v2569_v3  }
 0x1a4   :  { %2414 = vset.pattern.permute.xlu1 %v2518_v54 }
 0x1a5   :  { %408 = vperm.xlu1 %2414, %v2569_v3   ;;  %336 = vperm.xlu0 %2426, %v2581_v8  }
 0x1a9   :  { %2416 = vset.pattern.permute.xlu1 %v2511_v40  ;;  %2431 = vset.pattern.permute.xlu0 %v2516_v52 }
 0x1aa   :  { %352 = vperm.xlu1 %2416, %v2581_v8  }
 0x1ae   :  { %2417 = vset.pattern.permute.xlu1 %v2517_v53 }
 0x1af   :  { %396 = vperm.xlu1 %2417, %v2576_v6  }
 0x1b3   :  { %2418 = vset.pattern.permute.xlu1 %v2515_v51 }
 0x1b4   :  { %364 = vperm.xlu1 %2418, %v2576_v6  }
 0x1b8   :  { %368 = vperm.xlu1 %2418, %v2581_v8  }
 0x1bc   :  { %2420 = vset.pattern.permute.xlu1 %v2518_v54 }
 0x1bd   :  { %412 = vperm.xlu1 %2420, %v2576_v6  }
 0x1c1   :  { %2423 = vset.pattern.permute.xlu1 %v2519_v55 }
 0x1c2   :  { %278 = vperm.xlu1 %2423, %v2569_v3  }
 0x1c6   :  { %2424 = vset.pattern.permute.xlu1 %v2520_v56 }
 0x1c7   :  { %324 = vperm.xlu1 %2424, %v2564_v2  }
 0x1cb   :  { %2425 = vset.pattern.permute.xlu1 %v2521_v59 }
 0x1cc   :  { %372 = vperm.xlu1 %2425, %v2564_v2  }
 0x1d0   :  { %376 = vperm.xlu1 %2425, %v2569_v3  }
 0x1d2   :  { %v426_v0 = vpop.permute.xlu1 %425  ;;  %v454_v10 = vpop.permute.xlu0 %453 }
 0x1d3   :  { %v465_v9 = vsel %vm463_vm12, %v426_v0, %v438_v58 }
 0x1d4   :  { %2427 = vset.pattern.permute.xlu1 %v2519_v55  ;;  %v470_v16 = vsel %vm468_vm13, %v465_v9, %v454_v10 }
 0x1d5   :  { %288 = vperm.xlu1 %2427, %v2581_v8  }
 0x1d6   :  { %v424_v4 = vpop.permute.xlu1 %423 }
 0x1d7   :  { %v464_v11 = vsel %vm463_vm12, %v424_v4, %v436_v57 }
 0x1d9   :  { %2428 = vset.pattern.permute.xlu1 %v2520_v56 }
 0x1da   :  { %v452_v12 = vpop.permute.xlu1 %451  ;;  %332 = vperm.xlu1 %2428, %v2576_v6  }
 0x1db   :  { %v469_v13 = vsel %vm468_vm13, %v464_v11, %v452_v12 }
 0x1dc   :  { %2200 = vmatprep.mubr.msk.f32.mxu0 %vm477_vm14, %v469_v13  ;;  %v458_v21 = vpop.permute.xlu0 %457 }
 0x1dd   :  { %2201 = vmatmul.mubr.msk.f32.vlgmr.msra.gmra.mrb[4].mxu0 %vm477_vm14, %v470_v16 }
 0x1de   :  { %v430_v17 = vpop.permute.xlu1 %429  ;;  %2429 = vset.pattern.permute.xlu1 %v2521_v59  ;;  %2324 = vmatpush3.bf16.msra.mxu0 %v2321_v62 }
 0x1df   :  { %380 = vperm.xlu1 %2429, %v2576_v6   ;;  %2327 = vmatprep.subr.msk.bf16.mxu0 %vm2624_vm11, %v2325_v14  ;;  %v467_v20 = vsel %vm463_vm12, %v430_v17, %v442_v1 }
 0x1e0   :  { %v472_v25 = vsel %vm468_vm13, %v467_v20, %v458_v21 }
 0x1e2   :  { %v428_v18 = vpop.permute.xlu1 %427  ;;  %2330 = vmatpush3.bf16.msk.msra.mxu0 %vm2624_vm11, %v2325_v14  ;;  %vm910_vm11 = vcmask 408576  }
 0x1e3   :  { %384 = vperm.xlu1 %2429, %v2581_v8   ;;  %v466_v22 = vsel %vm463_vm12, %v428_v18, %v440_v63 }
 0x1e6   :  { %v456_v23 = vpop.permute.xlu1 %455 }
 0x1e7   :  { %v471_v24 = vsel %vm468_vm13, %v466_v22, %v456_v23  ;;  %2430 = vset.pattern.permute.xlu1 %v2516_v52  ;;  %vm915_vm13 = vcmask 490496  }
 0x1e8   :  { %2203 = vmatprep.mubr.msk.f32.mxu0 %vm477_vm14, %v471_v24 }
 0x1e9   :  { %2204 = vmatmul.mubr.msk.f32.gmra.mrb[6].mxu0 %vm477_vm14, %v472_v25 }
 0x1ed   :  { %v2744_v31 = vpop.permute.xlu0 %344 }
 0x1f2   :  { %v2748_v33 = vpop.permute.xlu0 %356 }
 0x1f6   :  { %v2762_v39 = vpop.permute.xlu0 %360 }
 0x1f7   :  { %v2734_v26 = vpop.permute.xlu1 %292 }
 0x1fb   :  { %v2778_v42 = vpop.permute.xlu0 %296 }
 0x1fc   :  { %v2736_v27 = vpop.permute.xlu1 %340 }
 0x1ff   :  { %v2828_v4 = vpop.permute.xlu0 %304 }
 0x201   :  { %v2738_v28 = vpop.permute.xlu1 %308 }
 0x204   :  { %v2854_v12 = vpop.permute.xlu0 %316 }
 0x206   :  { %v2740_v29 = vpop.permute.xlu1 %388 }
 0x208   :  { %v2868_v20 = vpop.permute.xlu0 %320 }
 0x20b   :  { %v2742_v30 = vpop.permute.xlu1 %312 }
 0x20d   :  { %v2878_v23 = vpop.permute.xlu0 %400 }
 0x210   :  { %v2746_v32 = vpop.permute.xlu1 %392 }
 0x215   :  { %v2750_v34 = vpop.permute.xlu1 %300 }
 0x21a   :  { %v2769_v40 = vpop.permute.xlu1 %404 }
 0x21f   :  { %v2784_v53 = vpop.permute.xlu1 %348 }
 0x224   :  { %v2803_v58 = vpop.permute.xlu1 %408 }
 0x229   :  { %v2816_v62 = vpop.permute.xlu1 %352 }
 0x22e   :  { %v2826_v1 = vpop.permute.xlu1 %396 }
 0x233   :  { %v2844_v11 = vpop.permute.xlu1 %364 }
 0x237   :  { %v2856_v13 = vpop.permute.xlu1 %368 }
 0x2b0   :  { %v2752_v35 = vpop.f32.mrb[4].mxu0 }
 0x2b1   :  { %v2754_v36 = vpop.f32.mrb[5].mxu0  ;;  %v708_v37 = vmul.f32 %v2752_v35, %v2744_v31  ;;  %v2760_v38 = vmul.f32 %v2752_v35, %v2752_v35  ;;  %v680_v41 = vmul.f32 %v2752_v35, %v2742_v30  ;;  %v760_v51 = vmul.f32 %v2752_v35, %v2746_v32 }
 0x2b2   :  { %2240 = vmatprep.mubr.msk.f32.mxu0 %vm477_vm14, %v2754_v36  ;;  %v656_v52 = vmul.f32 %v2752_v35, %v2778_v42  ;;  %v732_v56 = vmul.f32 %v2752_v35, %v2762_v39  ;;  %v2796_v57 = vmul.f32 %v2754_v36, %v2754_v36  ;;  %v679_v59 = vmul.f32 %v2754_v36, %v2738_v28 }
 0x2b3   :  { %717 = vrot.lane.b32.xlu0 %v708_v37, %s2522_s16  ;;  %589 = vrot.lane.b32.xlu1 %v2760_v38, %s2522_s16  ;;  %v655_v60 = vmul.f32 %v2754_v36, %v2734_v26  ;;  %v759_v61 = vmul.f32 %v2754_v36, %v2740_v29  ;;  %v707_v63 = vmul.f32 %v2754_v36, %v2736_v27  ;;  %v2886_v37 = vpop.permute.xlu1 %412 }
 0x2b4   :  { %2241 = vmatmul.mubr.msk.f32.vlgmr.msra.gmra.mrb[8].mxu0 %vm477_vm14, %v2752_v35  ;;  %v731_v0 = vmul.f32 %v2754_v36, %v2748_v33  ;;  %v783_v5 = vmul.f32 %v2754_v36, %v2769_v40  ;;  %v784_v16 = vmul.f32 %v2752_v35, %v2803_v58  ;;  %3475 = vst [vmem:[#allocation2_spill] sm:$0xff] %v2886_v37 }
 0x2b7   :  { %689 = vrot.lane.b32.xlu0 %v680_v41, %s2523_s17  ;;  %605 = vrot.lane.b32.xlu1 %v2760_v38, %s2523_s17 }
 0x2bb   :  { %769 = vrot.lane.b32.xlu0 %v760_v51, %s2522_s16  ;;  %665 = vrot.lane.b32.xlu1 %v656_v52, %s2522_s16 }
 0x2bc   :  { %v2788_v54 = vpop.f32.mrb[6].mxu0 }
 0x2bd   :  { %v2790_v55 = vpop.f32.mrb[7].mxu0  ;;  %v658_v7 = vmul.f32 %v2788_v54, %v2828_v4  ;;  %v2838_v9 = vmul.f32 %v2788_v54, %v2788_v54  ;;  %v734_v14 = vmul.f32 %v2788_v54, %v2856_v13  ;;  %v710_v18 = vmul.f32 %v2788_v54, %v2816_v62 }
 0x2be   :  { %2243 = vmatprep.mubr.msk.f32.mxu0 %vm477_vm14, %v2790_v55  ;;  %v2842_v10 = vmul.f32 %v2790_v55, %v2790_v55  ;;  %v657_v17 = vmul.f32 %v2790_v55, %v2750_v34  ;;  %v709_v21 = vmul.f32 %v2790_v55, %v2784_v53  ;;  %v682_v22 = vmul.f32 %v2788_v54, %v2868_v20 }
 0x2bf   :  { %741 = vrot.lane.b32.xlu0 %v732_v56, %s2523_s17  ;;  %587 = vrot.lane.b32.xlu1 %v2796_v57, %s2522_s16  ;;  %v681_v24 = vmul.f32 %v2790_v55, %v2854_v12  ;;  %v762_v25 = vmul.f32 %v2788_v54, %v2878_v23  ;;  %v761_v41 = vmul.f32 %v2790_v55, %v2826_v1  ;;  %v2899_v56 = vpop.permute.xlu0 %416 }
 0x2c0   :  { %2244 = vmatmul.mubr.msk.f32.gmra.mrb[10].mxu0 %vm477_vm14, %v2788_v54  ;;  %v785_v51 = vmul.f32 %v2790_v55, %v2886_v37  ;;  %v733_v52 = vmul.f32 %v2790_v55, %v2844_v11  ;;  %3476 = vst [vmem:[#allocation3_spill] sm:$0xff] %v2899_v56  ;;  %vm920_vm14 = vcmask 572416  }
 0x2c3   :  { %603 = vrot.lane.b32.xlu0 %v2796_v57, %s2523_s17  ;;  %687 = vrot.lane.b32.xlu1 %v679_v59, %s2523_s17  ;;  %v786_v59 = vmul.f32 %v2788_v54, %v2899_v56 }
 0x2c7   :  { %663 = vrot.lane.b32.xlu0 %v655_v60, %s2522_s16  ;;  %767 = vrot.lane.b32.xlu1 %v759_v61, %s2522_s16  ;;  %v2906_v60 = vpop.permute.xlu1 %278 }
 0x2c8   :  { %3477 = vst [vmem:[#allocation4_spill] sm:$0xff] %v2906_v60 }
 0x2cb   :  { %715 = vrot.lane.b32.xlu0 %v707_v63, %s2522_s16  ;;  %739 = vrot.lane.b32.xlu1 %v731_v0, %s2523_s17 }
 0x2cf   :  { %791 = vrot.lane.b32.xlu1 %v783_v5, %s2523_s17  ;;  %669 = vrot.lane.b32.xlu0 %v658_v7, %s2522_s16 }
 0x2d3   :  { %593 = vrot.lane.b32.xlu1 %v2838_v9, %s2522_s16  ;;  %591 = vrot.lane.b32.xlu0 %v2842_v10, %s2522_s16 }
 0x2d7   :  { %609 = vrot.lane.b32.xlu1 %v2838_v9, %s2523_s17  ;;  %607 = vrot.lane.b32.xlu0 %v2842_v10, %s2523_s17 }
 0x2db   :  { %745 = vrot.lane.b32.xlu1 %v734_v14, %s2523_s17  ;;  %793 = vrot.lane.b32.xlu0 %v784_v16, %s2523_s17 }
 0x2df   :  { %667 = vrot.lane.b32.xlu1 %v657_v17, %s2522_s16  ;;  %721 = vrot.lane.b32.xlu0 %v710_v18, %s2522_s16  ;;  %v652_v17 = vmul.f32 %v2752_v35, %v2906_v60 }
 0x2e3   :  { %719 = vrot.lane.b32.xlu1 %v709_v21, %s2522_s16  ;;  %693 = vrot.lane.b32.xlu0 %v682_v22, %s2523_s17 }
 0x2e7   :  { %691 = vrot.lane.b32.xlu1 %v681_v24, %s2523_s17  ;;  %773 = vrot.lane.b32.xlu0 %v762_v25, %s2522_s16 }
 0x2eb   :  { %771 = vrot.lane.b32.xlu1 %v761_v41, %s2522_s16  ;;  %795 = vrot.lane.b32.xlu0 %v785_v51, %s2523_s17  ;;  %s2529_s16 = smov 40  }
 0x2ef   :  { %743 = vrot.lane.b32.xlu1 %v733_v52, %s2523_s17  ;;  %807 = vrot.lane.b32.xlu0 %v2564_v2, %s2524_s18  ;;  %v2916_v2 = vpop.permute.xlu1 %324 }
 0x2f0   :  { %3478 = vst [vmem:[#allocation5_spill] sm:$0xff] %v2916_v2 }
 0x2f3   :  { %797 = vrot.lane.b32.xlu1 %v786_v59, %s2523_s17  ;;  %819 = vrot.lane.b32.xlu0 %v2641_v46, %s2525_s19  ;;  %v2920_v46 = vpop.permute.xlu1 %372 }
 0x2f7   :  { %809 = vrot.lane.b32.xlu1 %v2569_v3, %s2524_s18  ;;  %813 = vrot.lane.b32.xlu0 %v2581_v8, %s2524_s18  ;;  %v2924_v3 = vpop.permute.xlu1 %376  ;;  %v2928_v8 = vpop.permute.xlu0 %273 }
 0x2fb   :  { %821 = vrot.lane.b32.xlu1 %v2634_v44, %s2525_s19  ;;  %825 = vrot.lane.b32.xlu0 %v2650_v49, %s2525_s19  ;;  %v2926_v61 = vpop.permute.xlu1 %288  ;;  %v2932_v63 = vpop.permute.xlu0 %283 }
 0x2ff   :  { %811 = vrot.lane.b32.xlu1 %v2576_v6, %s2524_s18  ;;  %v2930_v44 = vpop.permute.xlu1 %332  ;;  %v2936_v0 = vpop.permute.xlu0 %328 }
 0x300   :  { %3479 = vst [vmem:[#allocation6_spill] sm:$0xff] %v2936_v0  ;;  %v704_v24 = vmul.f32 %v2752_v35, %v2936_v0 }
 0x303   :  { %823 = vrot.lane.b32.xlu1 %v2653_v50, %s2525_s19  ;;  %v2934_v49 = vpop.permute.xlu1 %380  ;;  %v2938_v6 = vpop.permute.xlu0 %336 }
 0x307   :  { %v2940_v5 = vpop.permute.xlu1 %384 }
 0x308   :  { %3480 = vst [vmem:[#allocation7_spill] sm:$0xff] %v2940_v5 }
 0x325   :  { %v718_v7 = vpop.permute.xlu0 %717  ;;  %v590_v50 = vpop.permute.xlu1 %589 }
 0x326   :  { %v728_v52 = vadd.f32 %v718_v7, %v704_v24 }
 0x329   :  { %v690_v14 = vpop.permute.xlu0 %689  ;;  %v606_v16 = vpop.permute.xlu1 %605 }
 0x32d   :  { %v770_v18 = vpop.permute.xlu0 %769  ;;  %v666_v21 = vpop.permute.xlu1 %665 }
 0x32e   :  { %v676_v22 = vadd.f32 %v666_v21, %v652_v17  ;;  %v703_v17 = vmul.f32 %v2754_v36, %v2916_v2  ;;  %v925_v2 = vld [vmem:[%s3461_s3 + $0x20] sm:$0xff] }
 0x330   :  { %v700_v25 = vadd.f32 %v690_v14, %v676_v22  ;;  %v600_v14 = vadd.f32 %v590_v50, %v2760_v38  ;;  %v926_v38 = vld [vmem:[%s3461_s3 + $0x28] sm:$0xff] }
 0x331   :  { %v742_v41 = vpop.permute.xlu0 %741  ;;  %v588_v51 = vpop.permute.xlu1 %587 }
 0x332   :  { %853 = vrot.lane.b32.xlu0 %v700_v25, %s2526_s20  ;;  %v752_v59 = vadd.f32 %v742_v41, %v728_v52  ;;  %v616_v24 = vadd.f32 %v606_v16, %v600_v14  ;;  %v755_v25 = vmul.f32 %v2754_v36, %v2920_v46  ;;  %v599_v52 = vadd.f32 %v588_v51, %v2796_v57  ;;  %v928_v51 = vld [vmem:[%s3461_s3 + $0x38] sm:$0xff] }
 0x334   :  { %v2963_v50 = vadd.f32 1e-08, %v616_v24 }
 0x335   :  { %v604_v15 = vpop.permute.xlu0 %603  ;;  %v2947_v19 = vpop.permute.xlu1 %687 }
 0x336   :  { %869 = vrot.lane.b32.xlu0 %v752_v59, %s2527_s21  ;;  %v615_v16 = vadd.f32 %v604_v15, %v599_v52  ;;  %2442 = vrsqrt.f32 %v2963_v50  ;;  %v929_v52 = vld [vmem:[%s3461_s3 + $0x40] sm:$0xff]  ;;  %vm632_vm15 = vcmp.eq.f32.partialorder %v2963_v50, inf  ;;  %vm634_vm0 = vcmp.eq.f32.partialorder %v2963_v50, 0.0 }
 0x338   :  { %v2973_v15 = vadd.f32 1e-08, %v615_v16  ;;  %v651_v16 = vmul.f32 %v2754_v36, %v2928_v8  ;;  %v931_v36 = vld [vmem:[%s3461_s3 + $0x50] sm:$0xff] }
 0x339   :  { %v664_v60 = vpop.permute.xlu0 %663  ;;  %v768_v37 = vpop.permute.xlu1 %767 }
 0x33a   :  { %v779_v59 = vadd.f32 %v768_v37, %v755_v25  ;;  %v927_v37 = vld [vmem:[%s3461_s3 + $0x30] sm:$0xff]  ;;  %v756_v25 = vmul.f32 %v2752_v35, %v2924_v3  ;;  %2444 = vrsqrt.f32 %v2973_v15  ;;  %vm625_vm1 = vcmp.eq.f32.partialorder %v2973_v15, inf }
 0x33b   :  { %vm627_vm2 = vcmp.eq.f32.partialorder %v2973_v15, 0.0 }
 0x33d   :  { %v716_v21 = vpop.permute.xlu0 %715  ;;  %v740_v22 = vpop.permute.xlu1 %739 }
 0x33e   :  { %v727_v7 = vadd.f32 %v716_v21, %v703_v17  ;;  %v2301_v17 = vpack.c.bf16 %v926_v38, %v925_v2  ;;  %v2305_v2 = vpack.c.bf16 %v928_v51, %v927_v37 }
 0x340   :  { %v751_v41 = vadd.f32 %v740_v22, %v727_v7  ;;  %2302 = vmatprep.subr.bf16.mxu1 %v2301_v17  ;;  %v2443_v51 = vpop.eup %2442 }
 0x341   :  { %v792_v0 = vpop.permute.xlu1 %791  ;;  %v670_v56 = vpop.permute.xlu0 %669  ;;  %2304 = vmatpush3.bf16.msra.mxu1 %v2301_v17 }
 0x342   :  { %867 = vrot.lane.b32.xlu1 %v751_v41, %s2527_s21  ;;  %v803_v14 = vadd.f32 %v792_v0, %v779_v59  ;;  %2306 = vmatprep.subr.bf16.mxu1 %v2305_v2  ;;  %v930_v59 = vld [vmem:[%s3461_s3 + $0x48] sm:$0xff] }
 0x345   :  { %v594_v21 = vpop.permute.xlu1 %593  ;;  %v592_v57 = vpop.permute.xlu0 %591  ;;  %2308 = vmatpush3.bf16.msra.mxu1 %v2305_v2 }
 0x346   :  { %883 = vrot.lane.b32.xlu1 %v803_v14, %s2528_s0  ;;  %v602_v0 = vadd.f32 %v594_v21, %v2838_v9  ;;  %v601_v22 = vadd.f32 %v592_v57, %v2842_v10  ;;  %v2309_v9 = vpack.c.bf16 %v930_v59, %v929_v52  ;;  %v780_v10 = vadd.f32 %v770_v18, %v756_v25  ;;  %v2445_v52 = vpop.eup %2444 }
 0x347   :  { %v675_v21 = vadd.f32 %v664_v60, %v651_v16  ;;  %v631_v25 = vmul.f32 %v2443_v51, %v2963_v50 }
 0x348   :  { %2310 = vmatprep.subr.bf16.mxu1 %v2309_v9 }
 0x349   :  { %v610_v7 = vpop.permute.xlu1 %609  ;;  %v608_v24 = vpop.permute.xlu0 %607  ;;  %2312 = vmatpush3.bf16.msra.mxu1 %v2309_v9  ;;  %v699_v60 = vadd.f32 %v2947_v19, %v675_v21  ;;  %v934_v19 = vld [vmem:[%s3461_s3 + $0x68] sm:$0xff]  ;;  %v633_v21 = vsel %vm632_vm15, %v2963_v50, %v631_v25  ;;  %vm940_vm15 = vcmask 654336  }
 0x34a   :  { %v618_v41 = vadd.f32 %v610_v7, %v602_v0  ;;  %v617_v38 = vadd.f32 %v608_v24, %v601_v22  ;;  %v932_v0 = vld [vmem:[%s3461_s3 + $0x58] sm:$0xff]  ;;  %v654_v22 = vmul.f32 %v2788_v54, %v2926_v61 }
 0x34b   :  { %v2313_v7 = vpack.c.bf16 %v932_v0, %v931_v36  ;;  %v635_v0 = vand.u32 2147483648, %v2963_v50  ;;  %v705_v50 = vmul.f32 %v2790_v55, %v2930_v44 }
 0x34c   :  { %v2988_v17 = vadd.f32 1e-08, %v618_v41  ;;  %v2991_v37 = vadd.f32 1e-08, %v617_v38  ;;  %v678_v24 = vadd.f32 %v670_v56, %v654_v22  ;;  %v933_v41 = vld [vmem:[%s3461_s3 + $0x60] sm:$0xff]  ;;  %v653_v56 = vmul.f32 %v2790_v55, %v2932_v63 }
 0x34d   :  { %v746_v35 = vpop.permute.xlu1 %745  ;;  %v794_v14 = vpop.permute.xlu0 %793  ;;  %2314 = vmatprep.subr.bf16.mxu1 %v2313_v7  ;;  %v2317_v9 = vpack.c.bf16 %v934_v19, %v933_v41  ;;  %v628_v19 = vand.u32 2147483648, %v2973_v15 }
 0x34e   :  { %v804_v57 = vadd.f32 %v794_v14, %v780_v10  ;;  %2446 = vrsqrt.f32 %v2988_v17  ;;  %2316 = vmatpush3.bf16.msra.mxu1 %v2313_v7  ;;  %v706_v14 = vmul.f32 %v2788_v54, %v2938_v6  ;;  %v636_v7 = vsel %vm634_vm0, %v635_v0, %v633_v21 }
 0x34f   :  { %2448 = vrsqrt.f32 %v2991_v37  ;;  %2318 = vmatprep.subr.bf16.mxu1 %v2317_v9  ;;  %vm646_vm3 = vcmp.eq.f32.partialorder %v2988_v17, inf  ;;  %vm648_vm4 = vcmp.eq.f32.partialorder %v2988_v17, 0.0  ;;  %vm639_vm5 = vcmp.eq.f32.partialorder %v2991_v37, inf }
 0x350   :  { %885 = vrot.lane.b32.xlu0 %v804_v57, %s2528_s0  ;;  %v624_v57 = vmul.f32 %v2445_v52, %v2973_v15  ;;  %vm641_vm6 = vcmp.eq.f32.partialorder %v2991_v37, 0.0  ;;  %vm1204_vm0 = vcmask 1043456  }
 0x351   :  { %v668_v2 = vpop.permute.xlu1 %667  ;;  %v722_v18 = vpop.permute.xlu0 %721 }
 0x352   :  { %v677_v16 = vadd.f32 %v668_v2, %v653_v56  ;;  %2320 = vmatpush3.bf16.msra.mxu1 %v2317_v9  ;;  %v626_v2 = vsel %vm625_vm1, %v2973_v15, %v624_v57  ;;  %vm3098_vm1 = vmpackc.low %vm1204_vm0, %vm2512_vm10 }
 0x353   :  { %v629_v9 = vsel %vm627_vm2, %v628_v19, %v626_v2 }
 0x354   :  { %851 = vrot.lane.b32.xlu0 %v699_v60, %s2526_s20  ;;  %v730_v60 = vadd.f32 %v722_v18, %v706_v14  ;;  %v649_v14 = vand.u32 2147483648, %v2988_v17 }
 0x355   :  { %v720_v59 = vpop.permute.xlu1 %719  ;;  %v694_v38 = vpop.permute.xlu0 %693 }
 0x356   :  { %v702_v10 = vadd.f32 %v694_v38, %v678_v24  ;;  %v754_v18 = vadd.f32 %v746_v35, %v730_v60  ;;  %v757_v38 = vmul.f32 %v2790_v55, %v2934_v49  ;;  %v729_v56 = vadd.f32 %v720_v59, %v705_v50 }
 0x358   :  { %857 = vrot.lane.b32.xlu1 %v702_v10, %s2526_s20  ;;  %v2447_v51 = vpop.eup %2446 }
 0x359   :  { %v692_v36 = vpop.permute.xlu1 %691  ;;  %v645_v24 = vmul.f32 %v2447_v51, %v2988_v17  ;;  %v2449_v25 = vpop.eup %2448  ;;  %v642_v51 = vand.u32 2147483648, %v2991_v37 }
 0x35a   :  { %v701_v22 = vadd.f32 %v692_v36, %v677_v16  ;;  %v774_v52 = vpop.permute.xlu0 %773  ;;  %v638_v35 = vmul.f32 %v2449_v25, %v2991_v37  ;;  %v758_v36 = vmul.f32 %v2788_v54, %v2940_v5 }
 0x35b   :  { %v647_v10 = vsel %vm646_vm3, %v2988_v17, %v645_v24 }
 0x35c   :  { %855 = vrot.lane.b32.xlu0 %v701_v22, %s2526_s20  ;;  %837 = vrot.lane.b32.xlu1 %v636_v7, %s2529_s16  ;;  %v650_v55 = vsel %vm648_vm4, %v649_v14, %v647_v10  ;;  %v640_v59 = vsel %vm639_vm5, %v2991_v37, %v638_v35  ;;  %v782_v22 = vadd.f32 %v774_v52, %v758_v36 }
 0x35d   :  { %v772_v41 = vpop.permute.xlu1 %771  ;;  %v643_v17 = vsel %vm641_vm6, %v642_v51, %v640_v59 }
 0x35e   :  { %v781_v15 = vadd.f32 %v772_v41, %v757_v38  ;;  %v796_v57 = vpop.permute.xlu0 %795 }
 0x360   :  { %835 = vrot.lane.b32.xlu0 %v629_v9, %s2529_s16  ;;  %873 = vrot.lane.b32.xlu1 %v754_v18, %s2527_s21  ;;  %v805_v0 = vadd.f32 %v796_v57, %v781_v15 }
 0x361   :  { %v744_v16 = vpop.permute.xlu1 %743 }
 0x362   :  { %v753_v21 = vadd.f32 %v744_v16, %v729_v56  ;;  %v808_v41 = vpop.permute.xlu0 %807 }
 0x364   :  { %871 = vrot.lane.b32.xlu0 %v753_v21, %s2527_s21  ;;  %841 = vrot.lane.b32.xlu1 %v650_v55, %s2529_s16 }
 0x365   :  { %v798_v60 = vpop.permute.xlu1 %797 }
 0x366   :  { %v806_v7 = vadd.f32 %v798_v60, %v782_v22  ;;  %v820_v37 = vpop.permute.xlu0 %819 }
 0x368   :  { %839 = vrot.lane.b32.xlu1 %v643_v17, %s2529_s16  ;;  %887 = vrot.lane.b32.xlu0 %v805_v0, %s2528_s0  ;;  %v896_v0 = vsel %vm895_vm7, %v2638_v45, %v808_v41 }
 0x369   :  { %v810_v19 = vpop.permute.xlu1 %809  ;;  %v901_v17 = vsel %vm900_vm9, %v896_v0, %v820_v37 }
 0x36a   :  { %v814_v18 = vpop.permute.xlu0 %813  ;;  %v897_v55 = vsel %vm895_vm7, %v2632_v43, %v810_v19 }
 0x36b   :  { %v899_v45 = vsel %vm895_vm7, %v2645_v47, %v814_v18 }
 0x36c   :  { %889 = vrot.lane.b32.xlu1 %v806_v7, %s2528_s0 }
 0x36d   :  { %v822_v50 = vpop.permute.xlu1 %821 }
 0x36e   :  { %v826_v52 = vpop.permute.xlu0 %825  ;;  %v902_v59 = vsel %vm900_vm9, %v897_v55, %v822_v50 }
 0x36f   :  { %v904_v37 = vsel %vm900_vm9, %v899_v45, %v826_v52 }
 0x371   :  { %v812_v38 = vpop.permute.xlu1 %811 }
 0x375   :  { %v824_v56 = vpop.permute.xlu1 %823 }
 0x387   :  { %v3051_v2 = vpop.f32.mrb[8].mxu0 }
 0x388   :  { %v3053_v24 = vpop.f32.mrb[9].mxu0 }
 0x393   :  { %v3055_v25 = vpop.f32.mrb[10].mxu0 }
 0x394   :  { %v3057_v54 = vpop.f32.mrb[11].mxu0 }
 0x3a4   :  { %v854_v9 = vpop.permute.xlu0 %853 }
 0x3a8   :  { %v870_v10 = vpop.permute.xlu0 %869 }
 0x3b4   :  { %v868_v35 = vpop.permute.xlu1 %867 }
 0x3b8   :  { %v884_v14 = vpop.permute.xlu1 %883 }
 0x3c2   :  { %v886_v16 = vpop.permute.xlu0 %885 }
 0x3c6   :  { %v852_v15 = vpop.permute.xlu0 %851 }
 0x3ca   :  { %v858_v21 = vpop.permute.xlu1 %857 }
 0x3ce   :  { %v838_v57 = vpop.permute.xlu1 %837  ;;  %v856_v51 = vpop.permute.xlu0 %855 }
 0x3cf   :  { %v907_v36 = vsel %vm905_vm8, %v902_v59, %v838_v57 }
 0x3d0   :  { %v912_v60 = vsel %vm910_vm11, %v907_v36, %v854_v9 }
 0x3d1   :  { %v917_v43 = vsel %vm915_vm13, %v912_v60, %v870_v10 }
 0x3d2   :  { %v874_v22 = vpop.permute.xlu1 %873  ;;  %v836_v7 = vpop.permute.xlu0 %835  ;;  %v922_v59 = vsel %vm920_vm14, %v917_v43, %v886_v16 }
 0x3d3   :  { %v906_v5 = vsel %vm905_vm8, %v901_v17, %v836_v7 }
 0x3d4   :  { %v911_v19 = vsel %vm910_vm11, %v906_v5, %v852_v15  ;;  %v898_v5 = vsel %vm895_vm7, %v2647_v48, %v812_v38  ;;  %v1190_v48 = vld [vmem:[%s3461_s3 + $0x98] sm:$0xff]  ;;  %v1191_v38 = vld [vmem:[%s3461_s3 + $0xa0] sm:$0xf] }
 0x3d5   :  { %v916_v50 = vsel %vm915_vm13, %v911_v19, %v868_v35  ;;  %v903_v35 = vsel %vm900_vm9, %v898_v5, %v824_v56  ;;  %v2331_v56 = vpack.c.bf16 %v1191_v38, %v1190_v48 }
 0x3d6   :  { %v842_v41 = vpop.permute.xlu1 %841  ;;  %v921_v9 = vsel %vm920_vm14, %v916_v50, %v884_v14  ;;  %v872_v55 = vpop.permute.xlu0 %871 }
 0x3d7   :  { %2226 = vmatprep.mubr.msk.f32.mxu1 %vm940_vm15, %v921_v9  ;;  %v909_v10 = vsel %vm905_vm8, %v904_v37, %v842_v41  ;;  %2333 = vmatprep.subr.msk.bf16.mxu0 %vm3098_vm1, %v2331_v56 }
 0x3d8   :  { %2227 = vmatmul.mubr.msk.f32.vlgmr.msra.gmra.mrb[4].mxu1 %vm940_vm15, %v922_v59  ;;  %v914_v18 = vsel %vm910_vm11, %v909_v10, %v858_v21  ;;  %2336 = vmatpush3.bf16.msk.msra.mxu0 %vm3098_vm1, %v2331_v56 }
 0x3d9   :  { %v919_v0 = vsel %vm915_vm13, %v914_v18, %v874_v22 }
 0x3da   :  { %v840_v47 = vpop.permute.xlu1 %839  ;;  %v888_v57 = vpop.permute.xlu0 %887 }
 0x3db   :  { %v908_v14 = vsel %vm905_vm8, %v903_v35, %v840_v47 }
 0x3dc   :  { %v913_v52 = vsel %vm910_vm11, %v908_v14, %v856_v51  ;;  %v2071_v51 = vld [vmem:[%s3461_s3 + $0x70] ss:$0 sm:$0xff]  ;;  %vm1589_vm11 = vcmask 162816  }
 0x3dd   :  { %v918_v15 = vsel %vm915_vm13, %v913_v52, %v872_v55  ;;  %vm1598_vm13 = vcmask 228352  }
 0x3de   :  { %v923_v16 = vsel %vm920_vm14, %v918_v15, %v888_v57  ;;  %v890_v36 = vpop.permute.xlu1 %889 }
 0x3df   :  { %v924_v60 = vsel %vm920_vm14, %v919_v0, %v890_v36  ;;  %2229 = vmatprep.mubr.msk.f32.mxu1 %vm940_vm15, %v923_v16  ;;  %v1738_v16 = vld [vmem:[%s3461_s3 + $0xd0] sm:$0xff]  ;;  %v1739_v36 = vld [vmem:[%s3461_s3 + $0xd8] sm:$0xf]  ;;  %vm1612_vm14 = vcmask 261120  }
 0x3e0   :  { %2230 = vmatmul.mubr.msk.f32.gmra.mrb[6].mxu1 %vm940_vm15, %v924_v60  ;;  %v2345_v48 = vpack.c.bf16 %v1739_v36, %v1738_v16  ;;  %v3485_v36 = vld [vmem:[#allocation4_spill] sm:$0xff] }
 0x3e2   :  { %2347 = vmatprep.subr.msk.bf16.mxu0 %vm3098_vm1, %v2345_v48 }
 0x4ab   :  { %v2228_v17 = vpop.f32.mrb[4].mxu1 }
 0x4ac   :  { %v1025_v22 = vadd.f32 %v2228_v17, %v2071_v51  ;;  %v1019_v7 = vpop.f32.mrb[5].mxu1 }
 0x4ad   :  { %v1020_v43 = vadd.f32 %v2071_v51, %v1019_v7 }
 0x4ae   :  { %v2077_v19 = vmul.f32 -1.442695, %v1025_v22 }
 0x4af   :  { %v2076_v50 = vmul.f32 -1.442695, %v1020_v43 }
 0x4b0   :  { %2450 = vpow2.f32 %v2077_v19 }
 0x4b1   :  { %2452 = vpow2.f32 %v2076_v50 }
 0x4b3   :  { %v2231_v45 = vpop.f32.mrb[6].mxu1 }
 0x4b4   :  { %v1035_v41 = vadd.f32 %v2231_v45, %v2071_v51  ;;  %v1029_v9 = vpop.f32.mrb[7].mxu1 }
 0x4b5   :  { %v1030_v37 = vadd.f32 %v2071_v51, %v1029_v9 }
 0x4b6   :  { %v2079_v55 = vmul.f32 -1.442695, %v1035_v41 }
 0x4b7   :  { %v2078_v59 = vmul.f32 -1.442695, %v1030_v37 }
 0x4b8   :  { %2454 = vpow2.f32 %v2079_v55 }
 0x4b9   :  { %2456 = vpow2.f32 %v2078_v59 }
 0x4ba   :  { %v2451_v10 = vpop.eup %2450 }
 0x4bb   :  { %v2453_v5 = vpop.eup %2452  ;;  %v1051_v35 = vadd.f32 1.0, %v2451_v10 }
 0x4bc   :  { %v1050_v47 = vadd.f32 1.0, %v2453_v5 }
 0x4bd   :  { %2458 = vrcp.f32 %v1051_v35 }
 0x4be   :  { %2460 = vrcp.f32 %v1050_v47 }
 0x4c2   :  { %v2455_v18 = vpop.eup %2454 }
 0x4c3   :  { %v2457_v14 = vpop.eup %2456  ;;  %v1053_v52 = vadd.f32 1.0, %v2455_v18 }
 0x4c4   :  { %v1052_v15 = vadd.f32 1.0, %v2457_v14  ;;  %v3483_v14 = vld [vmem:[#allocation3_spill] sm:$0xff] }
 0x4c5   :  { %2462 = vrcp.f32 %v1053_v52  ;;  %v3484_v52 = vld [vmem:[#allocation2_spill] sm:$0xff] }
 0x4c6   :  { %2464 = vrcp.f32 %v1052_v15 }
 0x4c7   :  { %v2459_v57 = vpop.eup %2458 }
 0x4c8   :  { %v2461_v0 = vpop.eup %2460  ;;  %v3115_v60 = vmul.f32 %v2459_v57, %v1025_v22  ;;  %1176 = vrot.lane.b32.xlu1 %v2459_v57, %s2513_s6 }
 0x4c9   :  { %v3118_v38 = vmul.f32 %v2461_v0, %v1020_v43  ;;  %1174 = vrot.lane.b32.xlu0 %v2461_v0, %s2513_s6 }
 0x4cf   :  { %v2463_v56 = vpop.eup %2462 }
 0x4d0   :  { %v2465_v51 = vpop.eup %2464  ;;  %v3123_v17 = vmul.f32 %v2463_v56, %v1035_v41  ;;  %1180 = vrot.lane.b32.xlu1 %v2463_v56, %s2513_s6 }
 0x4d1   :  { %v3126_v7 = vmul.f32 %v2465_v51, %v1030_v37  ;;  %1178 = vrot.lane.b32.xlu0 %v2465_v51, %s2513_s6  ;;  %v3486_v51 = vld [vmem:[#allocation6_spill] sm:$0xff] }
 0x53a   :  { %v1177_v22 = vpop.permute.xlu1 %1176 }
 0x53b   :  { %v1175_v19 = vpop.permute.xlu0 %1174  ;;  %v3133_v50 = vmul.f32 %v3051_v2, %v1177_v22 }
 0x53c   :  { %v3130_v43 = vmul.f32 %v1175_v19, %v3053_v24 }
 0x53e   :  { %2250 = vmatprep.mubr.msk.f32.mxu0 %vm463_vm12, %v3130_v43 }
 0x53f   :  { %2251 = vmatmul.mubr.msk.f32.vlgmr.msra.gmra.mrb[12].mxu0 %vm463_vm12, %v3133_v50 }
 0x540   :  { %2350 = vmatpush3.bf16.msk.msra.mxu0 %vm3098_vm1, %v2345_v48 }
 0x542   :  { %v1181_v45 = vpop.permute.xlu1 %1180 }
 0x543   :  { %v1179_v41 = vpop.permute.xlu0 %1178  ;;  %v3145_v24 = vmul.f32 %v3055_v25, %v1181_v45 }
 0x544   :  { %v3142_v9 = vmul.f32 %v1179_v41, %v3057_v54 }
 0x546   :  { %2253 = vmatprep.mubr.msk.f32.mxu0 %vm463_vm12, %v3142_v9 }
 0x547   :  { %2254 = vmatmul.mubr.msk.f32.gmra.mrb[14].mxu0 %vm463_vm12, %v3145_v24 }
 0x612   :  { %v3151_v2 = vpop.f32.mrb[12].mxu0 }
 0x613   :  { %v3153_v37 = vpop.f32.mrb[13].mxu0  ;;  %v1422_v21 = vmul.f32 %v3151_v2, %v2744_v31  ;;  %v3159_v54 = vmul.f32 %v3151_v2, %v3151_v2  ;;  %v1394_v25 = vmul.f32 %v3151_v2, %v2742_v30  ;;  %v1474_v59 = vmul.f32 %v3151_v2, %v2746_v32 }
 0x614   :  { %2274 = vmatprep.mubr.msk.f32.mxu0 %vm463_vm12, %v3153_v37  ;;  %v1370_v10 = vmul.f32 %v3151_v2, %v2778_v42  ;;  %v1446_v30 = vmul.f32 %v3151_v2, %v2762_v39  ;;  %v1393_v5 = vmul.f32 %v3153_v37, %v2738_v28  ;;  %v1473_v32 = vmul.f32 %v3153_v37, %v2740_v29 }
 0x615   :  { %1431 = vrot.lane.b32.xlu0 %v1422_v21, %s2530_s27  ;;  %1303 = vrot.lane.b32.xlu1 %v3159_v54, %s2530_s27  ;;  %v3197_v42 = vmul.f32 %v3153_v37, %v3153_v37  ;;  %v1445_v39 = vmul.f32 %v3153_v37, %v2748_v33  ;;  %v1497_v28 = vmul.f32 %v3153_v37, %v2769_v40 }
 0x616   :  { %2275 = vmatmul.mubr.msk.f32.vlgmr.msra.gmra.mrb[16].mxu0 %vm463_vm12, %v3151_v2  ;;  %v1369_v29 = vmul.f32 %v3153_v37, %v2734_v26  ;;  %v1421_v35 = vmul.f32 %v3153_v37, %v2736_v27  ;;  %v1498_v47 = vmul.f32 %v3151_v2, %v2803_v58  ;;  %v1418_v22 = vmul.f32 %v3151_v2, %v3486_v51  ;;  %v1603_v51 = vld [vmem:[%s3461_s3 + $0xa8] sm:$0xff] }
 0x619   :  { %1403 = vrot.lane.b32.xlu0 %v1394_v25, %s2531_s28  ;;  %1319 = vrot.lane.b32.xlu1 %v3159_v54, %s2531_s28 }
 0x61a   :  { %v3173_v31 = vpop.f32.mrb[14].mxu0 }
 0x61b   :  { %v3175_v55 = vpop.f32.mrb[15].mxu0  ;;  %v3217_v33 = vmul.f32 %v3173_v31, %v3173_v31  ;;  %v1372_v40 = vmul.f32 %v3173_v31, %v2828_v4  ;;  %v1448_v26 = vmul.f32 %v3173_v31, %v2856_v13  ;;  %v1396_v58 = vmul.f32 %v3173_v31, %v2868_v20 }
 0x61c   :  { %2277 = vmatprep.mubr.msk.f32.mxu0 %vm463_vm12, %v3175_v55  ;;  %v3231_v27 = vmul.f32 %v3175_v55, %v3175_v55  ;;  %v1371_v4 = vmul.f32 %v3175_v55, %v2750_v34  ;;  %v1423_v13 = vmul.f32 %v3175_v55, %v2784_v53  ;;  %v1395_v18 = vmul.f32 %v3175_v55, %v2854_v12 }
 0x61d   :  { %1483 = vrot.lane.b32.xlu0 %v1474_v59, %s2530_s27  ;;  %1379 = vrot.lane.b32.xlu1 %v1370_v10, %s2530_s27  ;;  %v1424_v34 = vmul.f32 %v3173_v31, %v2816_v62  ;;  %v1475_v53 = vmul.f32 %v3175_v55, %v2826_v1  ;;  %v1447_v12 = vmul.f32 %v3175_v55, %v2844_v11 }
 0x61e   :  { %2278 = vmatmul.mubr.msk.f32.gmra.mrb[18].mxu0 %vm463_vm12, %v3173_v31  ;;  %v1476_v62 = vmul.f32 %v3173_v31, %v2878_v23  ;;  %v1500_v1 = vmul.f32 %v3173_v31, %v3483_v14  ;;  %v1499_v20 = vmul.f32 %v3175_v55, %v3484_v52  ;;  %v1366_v23 = vmul.f32 %v3151_v2, %v3485_v36 }
 0x621   :  { %1455 = vrot.lane.b32.xlu0 %v1446_v30, %s2531_s28  ;;  %1401 = vrot.lane.b32.xlu1 %v1393_v5, %s2531_s28 }
 0x625   :  { %1481 = vrot.lane.b32.xlu1 %v1473_v32, %s2530_s27  ;;  %1301 = vrot.lane.b32.xlu0 %v3197_v42, %s2530_s27 }
 0x629   :  { %1453 = vrot.lane.b32.xlu1 %v1445_v39, %s2531_s28  ;;  %1317 = vrot.lane.b32.xlu0 %v3197_v42, %s2531_s28 }
 0x62d   :  { %1505 = vrot.lane.b32.xlu1 %v1497_v28, %s2531_s28  ;;  %1377 = vrot.lane.b32.xlu0 %v1369_v29, %s2530_s27 }
 0x631   :  { %1429 = vrot.lane.b32.xlu0 %v1421_v35, %s2530_s27  ;;  %1307 = vrot.lane.b32.xlu1 %v3217_v33, %s2530_s27 }
 0x635   :  { %1383 = vrot.lane.b32.xlu0 %v1372_v40, %s2530_s27  ;;  %1323 = vrot.lane.b32.xlu1 %v3217_v33, %s2531_s28 }
 0x639   :  { %1459 = vrot.lane.b32.xlu1 %v1448_v26, %s2531_s28  ;;  %1305 = vrot.lane.b32.xlu0 %v3231_v27, %s2530_s27 }
 0x63d   :  { %1381 = vrot.lane.b32.xlu1 %v1371_v4, %s2530_s27  ;;  %1321 = vrot.lane.b32.xlu0 %v3231_v27, %s2531_s28 }
 0x641   :  { %1433 = vrot.lane.b32.xlu1 %v1423_v13, %s2530_s27  ;;  %1507 = vrot.lane.b32.xlu0 %v1498_v47, %s2531_s28 }
 0x645   :  { %1405 = vrot.lane.b32.xlu1 %v1395_v18, %s2531_s28  ;;  %1435 = vrot.lane.b32.xlu0 %v1424_v34, %s2530_s27 }
 0x649   :  { %1485 = vrot.lane.b32.xlu1 %v1475_v53, %s2530_s27  ;;  %1407 = vrot.lane.b32.xlu0 %v1396_v58, %s2531_s28 }
 0x64d   :  { %1457 = vrot.lane.b32.xlu1 %v1447_v12, %s2531_s28  ;;  %1487 = vrot.lane.b32.xlu0 %v1476_v62, %s2530_s27 }
 0x651   :  { %1511 = vrot.lane.b32.xlu1 %v1500_v1, %s2531_s28  ;;  %1509 = vrot.lane.b32.xlu0 %v1499_v20, %s2531_s28  ;;  %v1470_v1 = vmul.f32 %v3151_v2, %v2924_v3  ;;  %v3487_v3 = vld [vmem:[#allocation5_spill] sm:$0xff] }
 0x652   :  { %v1417_v2 = vmul.f32 %v3153_v37, %v3487_v3 }
 0x687   :  { %v1304_v15 = vpop.permute.xlu1 %1303  ;;  %v1432_v57 = vpop.permute.xlu0 %1431 }
 0x688   :  { %v1442_v21 = vadd.f32 %v1432_v57, %v1418_v22  ;;  %v1314_v28 = vadd.f32 %v1304_v15, %v3159_v54  ;;  %v1365_v15 = vmul.f32 %v3153_v37, %v2928_v8  ;;  %v1604_v22 = vld [vmem:[%s3461_s3 + $0xb0] sm:$0xff] }
 0x68b   :  { %v1320_v11 = vpop.permute.xlu1 %1319  ;;  %v1404_v16 = vpop.permute.xlu0 %1403 }
 0x68c   :  { %v1330_v40 = vadd.f32 %v1320_v11, %v1314_v28 }
 0x68e   :  { %v3280_v13 = vadd.f32 1e-08, %v1330_v40 }
 0x68f   :  { %v1380_v0 = vpop.permute.xlu1 %1379  ;;  %v1484_v48 = vpop.permute.xlu0 %1483 }
 0x690   :  { %v1390_v56 = vadd.f32 %v1380_v0, %v1366_v23  ;;  %2466 = vrsqrt.f32 %v3280_v13  ;;  %vm1346_vm10 = vcmp.eq.f32.partialorder %v3280_v13, inf  ;;  %vm1348_vm12 = vcmp.eq.f32.partialorder %v3280_v13, 0.0 }
 0x692   :  { %v1414_v19 = vadd.f32 %v1404_v16, %v1390_v56  ;;  %v1368_v56 = vmul.f32 %v3173_v31, %v2926_v61  ;;  %v1469_v61 = vmul.f32 %v3153_v37, %v2920_v46  ;;  %v1605_v46 = vld [vmem:[%s3461_s3 + $0xb8] sm:$0xff]  ;;  %v1606_v37 = vld [vmem:[%s3461_s3 + $0xc0] sm:$0xff] }
 0x693   :  { %v1402_v45 = vpop.permute.xlu1 %1401  ;;  %v1456_v41 = vpop.permute.xlu0 %1455  ;;  %v2341_v40 = vpack.c.bf16 %v1606_v37, %v1605_v46 }
 0x694   :  { %1543 = vrot.lane.b32.xlu1 %v1414_v19, %s2532_s29  ;;  %v1466_v25 = vadd.f32 %v1456_v41, %v1442_v21  ;;  %v2337_v19 = vpack.c.bf16 %v1604_v22, %v1603_v51 }
 0x696   :  { %2338 = vmatprep.subr.bf16.mxu1 %v2337_v19 }
 0x697   :  { %v1482_v59 = vpop.permute.xlu1 %1481  ;;  %v1302_v10 = vpop.permute.xlu0 %1301  ;;  %2340 = vmatpush3.bf16.msra.mxu1 %v2337_v19 }
 0x698   :  { %1559 = vrot.lane.b32.xlu1 %v1466_v25, %s2525_s19  ;;  %v1313_v47 = vadd.f32 %v1302_v10, %v3197_v42  ;;  %v1493_v28 = vadd.f32 %v1482_v59, %v1469_v61  ;;  %v1349_v59 = vand.u32 2147483648, %v3280_v13  ;;  %2342 = vmatprep.subr.bf16.mxu1 %v2341_v40 }
 0x69a   :  { %v2467_v23 = vpop.eup %2466 }
 0x69b   :  { %v1454_v30 = vpop.permute.xlu1 %1453  ;;  %v1318_v5 = vpop.permute.xlu0 %1317  ;;  %2344 = vmatpush3.bf16.msra.mxu1 %v2341_v40 }
 0x69c   :  { %v1329_v58 = vadd.f32 %v1318_v5, %v1313_v47 }
 0x69e   :  { %v3290_v52 = vadd.f32 1e-08, %v1329_v58 }
 0x69f   :  { %v3277_v32 = vpop.permute.xlu1 %1505  ;;  %v1378_v39 = vpop.permute.xlu0 %1377 }
 0x6a0   :  { %2468 = vrsqrt.f32 %v3290_v52  ;;  %v1389_v11 = vadd.f32 %v1378_v39, %v1365_v15  ;;  %vm1339_vm2 = vcmp.eq.f32.partialorder %v3290_v52, inf  ;;  %v1419_v15 = vmul.f32 %v3175_v55, %v2930_v44 }
 0x6a1   :  { %vm1341_vm4 = vcmp.eq.f32.partialorder %v3290_v52, 0.0  ;;  %v1471_v44 = vmul.f32 %v3175_v55, %v2934_v49 }
 0x6a2   :  { %v1413_v8 = vadd.f32 %v1402_v45, %v1389_v11  ;;  %v1345_v45 = vmul.f32 %v2467_v23, %v3280_v13  ;;  %v3488_v23 = vld [vmem:[#allocation7_spill] sm:$0xff] }
 0x6a3   :  { %v1308_v29 = vpop.permute.xlu1 %1307  ;;  %v1430_v35 = vpop.permute.xlu0 %1429 }
 0x6a4   :  { %v1316_v18 = vadd.f32 %v1308_v29, %v3217_v33  ;;  %v1494_v33 = vadd.f32 %v1484_v48, %v1470_v1  ;;  %v1441_v48 = vadd.f32 %v1430_v35, %v1417_v2  ;;  %v1420_v29 = vmul.f32 %v3173_v31, %v2938_v6 }
 0x6a5   :  { %v1347_v35 = vsel %vm1346_vm10, %v3280_v13, %v1345_v45  ;;  %v1517_v6 = vadd.f32 %v3277_v32, %v1493_v28 }
 0x6a6   :  { %v1465_v10 = vadd.f32 %v1454_v30, %v1441_v48 }
 0x6a7   :  { %v1324_v26 = vpop.permute.xlu1 %1323  ;;  %v1384_v4 = vpop.permute.xlu0 %1383 }
 0x6a8   :  { %v1332_v12 = vadd.f32 %v1324_v26, %v1316_v18  ;;  %v1392_v41 = vadd.f32 %v1384_v4, %v1368_v56  ;;  %v1367_v26 = vmul.f32 %v3175_v55, %v2932_v63  ;;  %v1350_v18 = vsel %vm1348_vm12, %v1349_v59, %v1347_v35 }
 0x6aa   :  { %v3292_v20 = vadd.f32 1e-08, %v1332_v12  ;;  %v2469_v39 = vpop.eup %2468 }
 0x6ab   :  { %v3284_v34 = vpop.permute.xlu1 %1459  ;;  %v1306_v53 = vpop.permute.xlu0 %1305  ;;  %v1338_v58 = vmul.f32 %v2469_v39, %v3290_v52 }
 0x6ac   :  { %v1315_v54 = vadd.f32 %v1306_v53, %v3231_v27  ;;  %2470 = vrsqrt.f32 %v3292_v20  ;;  %vm1360_vm3 = vcmp.eq.f32.partialorder %v3292_v20, inf  ;;  %vm1362_vm5 = vcmp.eq.f32.partialorder %v3292_v20, 0.0 }
 0x6ad   :  { %v1340_v13 = vsel %vm1339_vm2, %v3290_v52, %v1338_v58 }
 0x6af   :  { %v1382_v62 = vpop.permute.xlu1 %1381  ;;  %v1322_v14 = vpop.permute.xlu0 %1321 }
 0x6b0   :  { %v1331_v42 = vadd.f32 %v1322_v14, %v1315_v54  ;;  %v1391_v53 = vadd.f32 %v1382_v62, %v1367_v26 }
 0x6b2   :  { %v3298_v27 = vadd.f32 1e-08, %v1331_v42 }
 0x6b3   :  { %v1508_v57 = vpop.permute.xlu0 %1507  ;;  %v3300_v36 = vpop.permute.xlu1 %1433 }
 0x6b4   :  { %v1518_v16 = vadd.f32 %v1508_v57, %v1494_v33  ;;  %2472 = vrsqrt.f32 %v3298_v27  ;;  %v1342_v33 = vand.u32 2147483648, %v3290_v52  ;;  %vm1353_vm6 = vcmp.eq.f32.partialorder %v3298_v27, inf }
 0x6b5   :  { %v1356_v2 = vand.u32 2147483648, %v3298_v27  ;;  %vm1355_vm8 = vcmp.eq.f32.partialorder %v3298_v27, 0.0 }
 0x6b6   :  { %1575 = vrot.lane.b32.xlu0 %v1518_v16, %s2533_s30  ;;  %v2471_v30 = vpop.eup %2470  ;;  %v1343_v57 = vsel %vm1341_vm4, %v1342_v33, %v1340_v13  ;;  %v1443_v16 = vadd.f32 %v3300_v36, %v1419_v15 }
 0x6b7   :  { %v1436_v0 = vpop.permute.xlu0 %1435  ;;  %v1406_v21 = vpop.permute.xlu1 %1405  ;;  %v1359_v12 = vmul.f32 %v2471_v30, %v3292_v20 }
 0x6b8   :  { %v1444_v4 = vadd.f32 %v1436_v0, %v1420_v29  ;;  %v1415_v32 = vadd.f32 %v1406_v21, %v1391_v53 }
 0x6b9   :  { %v1361_v62 = vsel %vm1360_vm3, %v3292_v20, %v1359_v12 }
 0x6ba   :  { %1541 = vrot.lane.b32.xlu0 %v1413_v8, %s2532_s29  ;;  %v1468_v63 = vadd.f32 %v3284_v34, %v1444_v4  ;;  %v1363_v34 = vand.u32 2147483648, %v3292_v20  ;;  %v1472_v20 = vmul.f32 %v3173_v31, %v3488_v23 }
 0x6bb   :  { %v1408_v25 = vpop.permute.xlu0 %1407  ;;  %v1486_v47 = vpop.permute.xlu1 %1485 }
 0x6bc   :  { %v1416_v5 = vadd.f32 %v1408_v25, %v1392_v41  ;;  %v1364_v11 = vsel %vm1362_vm5, %v1363_v34, %v1361_v62  ;;  %v1495_v48 = vadd.f32 %v1486_v47, %v1471_v44 }
 0x6be   :  { %1557 = vrot.lane.b32.xlu0 %v1465_v10, %s2525_s19  ;;  %1547 = vrot.lane.b32.xlu1 %v1416_v5, %s2532_s29  ;;  %v2473_v54 = vpop.eup %2472 }
 0x6bf   :  { %v1352_v14 = vmul.f32 %v2473_v54, %v3298_v27  ;;  %v1458_v1 = vpop.permute.xlu1 %1457  ;;  %v1488_v42 = vpop.permute.xlu0 %1487 }
 0x6c0   :  { %v1467_v52 = vadd.f32 %v1458_v1, %v1443_v16  ;;  %v1496_v56 = vadd.f32 %v1488_v42, %v1472_v20  ;;  %v2090_v42 = vld [vmem:[%s3461_s3 + $0xc8] ss:$0 sm:$0xff] }
 0x6c1   :  { %v1354_v3 = vsel %vm1353_vm6, %v3298_v27, %v1352_v14 }
 0x6c2   :  { %1573 = vrot.lane.b32.xlu0 %v1517_v6, %s2533_s30  ;;  %1527 = vrot.lane.b32.xlu1 %v1350_v18, %s2524_s18  ;;  %v1357_v36 = vsel %vm1355_vm8, %v1356_v2, %v1354_v3 }
 0x6c3   :  { %v1512_v0 = vpop.permute.xlu1 %1511  ;;  %v1510_v8 = vpop.permute.xlu0 %1509 }
 0x6c4   :  { %v1520_v51 = vadd.f32 %v1512_v0, %v1496_v56  ;;  %v1519_v22 = vadd.f32 %v1510_v8, %v1495_v48 }
 0x6c6   :  { %1545 = vrot.lane.b32.xlu0 %v1415_v32, %s2532_s29  ;;  %1563 = vrot.lane.b32.xlu1 %v1468_v63, %s2525_s19 }
 0x6ca   :  { %1525 = vrot.lane.b32.xlu0 %v1343_v57, %s2524_s18  ;;  %1531 = vrot.lane.b32.xlu1 %v1364_v11, %s2524_s18 }
 0x6ce   :  { %1561 = vrot.lane.b32.xlu0 %v1467_v52, %s2525_s19  ;;  %1529 = vrot.lane.b32.xlu1 %v1357_v36, %s2524_s18 }
 0x6d2   :  { %1579 = vrot.lane.b32.xlu1 %v1520_v51, %s2533_s30  ;;  %1577 = vrot.lane.b32.xlu0 %v1519_v22, %s2533_s30 }
 0x6e9   :  { %v3368_v49 = vpop.f32.mrb[16].mxu0 }
 0x6ea   :  { %v3370_v31 = vpop.f32.mrb[17].mxu0 }
 0x6f1   :  { %v3372_v55 = vpop.f32.mrb[18].mxu0 }
 0x6f2   :  { %v3374_v27 = vpop.f32.mrb[19].mxu0 }
 0x706   :  { %v1544_v19 = vpop.permute.xlu1 %1543 }
 0x70a   :  { %v1560_v45 = vpop.permute.xlu1 %1559 }
 0x728   :  { %v1576_v41 = vpop.permute.xlu0 %1575 }
 0x72c   :  { %v1542_v21 = vpop.permute.xlu0 %1541 }
 0x730   :  { %v1548_v25 = vpop.permute.xlu1 %1547  ;;  %v1558_v61 = vpop.permute.xlu0 %1557 }
 0x734   :  { %v1528_v10 = vpop.permute.xlu1 %1527  ;;  %v1574_v5 = vpop.permute.xlu0 %1573 }
 0x735   :  { %v1586_v39 = vsel %vm895_vm7, %v3115_v60, %v1528_v10 }
 0x736   :  { %v1591_v35 = vsel %vm1589_vm11, %v1586_v39, %v1544_v19 }
 0x737   :  { %v1595_v59 = vsel %vm900_vm9, %v1591_v35, %v1560_v45 }
 0x738   :  { %v1564_v28 = vpop.permute.xlu1 %1563  ;;  %v1546_v29 = vpop.permute.xlu0 %1545  ;;  %v1600_v12 = vsel %vm1598_vm13, %v1595_v59, %v1576_v41 }
 0x73c   :  { %v1532_v46 = vpop.permute.xlu1 %1531  ;;  %v1526_v37 = vpop.permute.xlu0 %1525 }
 0x73d   :  { %v1585_v30 = vsel %vm895_vm7, %v3118_v38, %v1526_v37  ;;  %v1588_v40 = vsel %vm895_vm7, %v3123_v17, %v1532_v46 }
 0x73e   :  { %v1590_v6 = vsel %vm1589_vm11, %v1585_v30, %v1542_v21  ;;  %v1593_v53 = vsel %vm1589_vm11, %v1588_v40, %v1548_v25 }
 0x73f   :  { %v1594_v26 = vsel %vm900_vm9, %v1590_v6, %v1558_v61  ;;  %v1597_v63 = vsel %vm900_vm9, %v1593_v53, %v1564_v28  ;;  %v2104_v61 = vld [vmem:[%s3461_s3 + $0xe0] ss:$0 sm:$0xff] }
 0x740   :  { %v1530_v4 = vpop.permute.xlu1 %1529  ;;  %v1562_v47 = vpop.permute.xlu0 %1561  ;;  %v1599_v18 = vsel %vm1598_vm13, %v1594_v26, %v1574_v5 }
 0x741   :  { %v1587_v58 = vsel %vm895_vm7, %v3126_v7, %v1530_v4  ;;  %2264 = vmatprep.mubr.msk.f32.mxu1 %vm1612_vm14, %v1599_v18 }
 0x742   :  { %v1592_v54 = vsel %vm1589_vm11, %v1587_v58, %v1546_v29  ;;  %2265 = vmatmul.mubr.msk.f32.vlgmr.msra.gmra.mrb[8].mxu1 %vm1612_vm14, %v1600_v12 }
 0x743   :  { %v1596_v32 = vsel %vm900_vm9, %v1592_v54, %v1562_v47  ;;  %vm2535_vm9 = vmmov 0  }
 0x744   :  { %v1580_v13 = vpop.permute.xlu1 %1579  ;;  %v1578_v62 = vpop.permute.xlu0 %1577 }
 0x745   :  { %v1602_v14 = vsel %vm1598_vm13, %v1597_v63, %v1580_v13  ;;  %v1601_v1 = vsel %vm1598_vm13, %v1596_v32, %v1578_v62 }
 0x746   :  { %2267 = vmatprep.mubr.msk.f32.mxu1 %vm1612_vm14, %v1601_v1 }
 0x747   :  { %2268 = vmatmul.mubr.msk.f32.gmra.mrb[10].mxu1 %vm1612_vm14, %v1602_v14 }
 0x815   :  { %v2266_v33 = vpop.f32.mrb[8].mxu1 }
 0x816   :  { %v1697_v34 = vadd.f32 %v2266_v33, %v2090_v42  ;;  %v1691_v15 = vpop.f32.mrb[9].mxu1 }
 0x817   :  { %v1692_v57 = vadd.f32 %v2090_v42, %v1691_v15 }
 0x818   :  { %v2096_v11 = vmul.f32 -1.442695, %v1697_v34 }
 0x819   :  { %v2095_v16 = vmul.f32 -1.442695, %v1692_v57 }
 0x81a   :  { %2474 = vpow2.f32 %v2096_v11  ;;  %v2269_v3 = vpop.f32.mrb[10].mxu1 }
 0x81b   :  { %2476 = vpow2.f32 %v2095_v16  ;;  %v1707_v2 = vadd.f32 %v2269_v3, %v2090_v42  ;;  %v1701_v44 = vpop.f32.mrb[11].mxu1 }
 0x81c   :  { %v1702_v52 = vadd.f32 %v2090_v42, %v1701_v44 }
 0x81d   :  { %v2098_v23 = vmul.f32 -1.442695, %v1707_v2 }
 0x81e   :  { %v2097_v20 = vmul.f32 -1.442695, %v1702_v52 }
 0x81f   :  { %2478 = vpow2.f32 %v2098_v23 }
 0x820   :  { %2480 = vpow2.f32 %v2097_v20 }
 0x824   :  { %v2475_v0 = vpop.eup %2474 }
 0x825   :  { %v2477_v8 = vpop.eup %2476  ;;  %v1723_v36 = vadd.f32 1.0, %v2475_v0 }
 0x826   :  { %v1722_v48 = vadd.f32 1.0, %v2477_v8 }
 0x827   :  { %2482 = vrcp.f32 %v1723_v36 }
 0x828   :  { %2484 = vrcp.f32 %v1722_v48 }
 0x829   :  { %v2479_v56 = vpop.eup %2478 }
 0x82a   :  { %v2481_v51 = vpop.eup %2480  ;;  %v1725_v22 = vadd.f32 1.0, %v2479_v56 }
 0x82b   :  { %v1724_v19 = vadd.f32 1.0, %v2481_v51 }
 0x82c   :  { %2486 = vrcp.f32 %v1725_v22  ;;  %v1963_v22 = vld [vmem:[%s3462_s2] sm:$0x1] }
 0x82d   :  { %2488 = vrcp.f32 %v1724_v19  ;;  %v3490_v19 = vlaneseq }
 0x831   :  { %v2483_v41 = vpop.eup %2482 }
 0x832   :  { %v2485_v45 = vpop.eup %2484  ;;  %v1735_v21 = vmul.f32 %v2483_v41, %v1697_v34 }
 0x833   :  { %v1734_v25 = vmul.f32 %v2485_v45, %v1692_v57 }
 0x834   :  { %v3407_v10 = vadd.f32 %v1735_v21, %v3115_v60 }
 0x835   :  { %v3410_v5 = vadd.f32 %v1734_v25, %v3118_v38 }
 0x836   :  { %v2487_v39 = vpop.eup %2486  ;;  %v1874_v28 = vmul.f32 %v2104_v61, %v3407_v10 }
 0x837   :  { %v2489_v29 = vpop.eup %2488  ;;  %v1737_v35 = vmul.f32 %v2487_v39, %v1707_v2  ;;  %v1873_v46 = vmul.f32 %v2104_v61, %v3410_v5 }
 0x838   :  { %v1736_v37 = vmul.f32 %v2489_v29, %v1702_v52  ;;  %v1880_v30 = vsel %vm895_vm7, %v1874_v28, 0.0 }
 0x839   :  { %1881 = vadd.xlane.f32.xlu1 %v1880_v30  ;;  %v1877_v59 = vsel %vm895_vm7, %v1873_v46, 0.0  ;;  %v3417_v40 = vadd.f32 %v1737_v35, %v3123_v17 }
 0x83a   :  { %v3420_v60 = vadd.f32 %v1736_v37, %v3126_v7  ;;  %1878 = vadd.xlane.f32.xlu0 %v1877_v59 }
 0x83b   :  { %v1876_v26 = vmul.f32 %v2104_v61, %v3417_v40 }
 0x83c   :  { %v1875_v38 = vmul.f32 %v2104_v61, %v3420_v60 }
 0x83d   :  { %v1886_v4 = vsel %vm895_vm7, %v1876_v26, 0.0 }
 0x83e   :  { %v1883_v6 = vsel %vm895_vm7, %v1875_v38, 0.0 }
 0x83f   :  { %1884 = vadd.xlane.f32.xlu0 %v1883_v6 }
 0x843   :  { %1887 = vadd.xlane.f32.xlu0 %v1886_v4 }
 0x84a   :  { %1844 = vrot.lane.b32.xlu1 %v2485_v45, %s2513_s6  ;;  %v2365_v45 = vtrunc.f32 %v1963_v22 }
 0x84e   :  { %1848 = vrot.lane.b32.xlu1 %v2489_v29, %s2513_s6 }
 0x852   :  { %1850 = vrot.lane.b32.xlu1 %v2487_v39, %s2513_s6 }
 0x859   :  { %1846 = vrot.lane.b32.xlu0 %v2483_v41, %s2513_s6  ;;  %v1962_v41 = vshrl.u32 %v3490_v19, 7 }
 0x85b   :  { %v1967_v39 = vsub.s32 0, %v1962_v41 }
 0x8c6   :  { %v1882_v17 = vpop.xlane.xlu1 %1881 }
 0x8c7   :  { %v1890_v7 = vadd.f32 %v2104_v61, %v1882_v17  ;;  %v1879_v47 = vpop.xlane.xlu0 %1878 }
 0x8c8   :  { %v1889_v18 = vadd.f32 %v2104_v61, %v1879_v47 }
 0x8c9   :  { %v2106_v53 = vmul.f32 -1.442695, %v1890_v7 }
 0x8ca   :  { %v2105_v58 = vmul.f32 -1.442695, %v1889_v18  ;;  %v1845_v12 = vpop.permute.xlu1 %1844 }
 0x8cb   :  { %2490 = vpow2.f32 %v2106_v53  ;;  %v1856_v33 = vmul.f32 %v1845_v12, %v3370_v31 }
 0x8cc   :  { %2492 = vpow2.f32 %v2105_v58  ;;  %v1885_v54 = vpop.xlane.xlu0 %1884 }
 0x8cd   :  { %v1891_v32 = vadd.f32 %v2104_v61, %v1885_v54 }
 0x8ce   :  { %v1849_v63 = vpop.permute.xlu1 %1848 }
 0x8cf   :  { %v2107_v13 = vmul.f32 -1.442695, %v1891_v32  ;;  %v1858_v14 = vmul.f32 %v1849_v63, %v3374_v27  ;;  %v1864_v27 = vadd.f32 %v1856_v33, %v3130_v43  ;;  %v2534_v43 = vmov 0.0|0.0  }
 0x8d0   :  { %v1888_v62 = vpop.xlane.xlu0 %1887  ;;  %2351 = vmatprep.subr.bf16.mxu1 %v2534_v43 }
 0x8d1   :  { %2494 = vpow2.f32 %v2107_v13  ;;  %v1892_v1 = vadd.f32 %v2104_v61, %v1888_v62  ;;  %v1866_v16 = vadd.f32 %v1858_v14, %v3142_v9  ;;  %v2366_v61 = vcvt.f32.s32 %v2365_v45 }
 0x8d2   :  { %v1851_v42 = vpop.permute.xlu1 %1850 }
 0x8d3   :  { %v2108_v34 = vmul.f32 -1.442695, %v1892_v1  ;;  %v1859_v15 = vmul.f32 %v3372_v55, %v1851_v42  ;;  %v1968_v6 = vrot.slane %v2366_v61, %v1967_v39 }
 0x8d4   :  { %v1847_v57 = vpop.permute.xlu0 %1846 }
 0x8d5   :  { %v2491_v11 = vpop.eup %2490  ;;  %2496 = vpow2.f32 %v2108_v34  ;;  %v1867_v3 = vadd.f32 %v1859_v15, %v3145_v24  ;;  %v1857_v2 = vmul.f32 %v3368_v49, %v1847_v57  ;;  %vm1969_vm15 = vcmp.eq.s32.totalorder %v1962_v41, %v1968_v6 }
 0x8d6   :  { %v2493_v44 = vpop.eup %2492  ;;  %v1906_v52 = vadd.f32 1.0, %v2491_v11 }
 0x8d7   :  { %v1905_v23 = vadd.f32 1.0, %v2493_v44  ;;  %v2437_v20 = vpack.i.bf16 %v1867_v3, %v1866_v16  ;;  %v1865_v31 = vadd.f32 %v1857_v2, %v3133_v50  ;;  %v3489_v50 = vmov 0.0  }
 0x8d8   :  { %2498 = vrcp.f32 %v1906_v52  ;;  %2288 = vmatprep.mubr.msk.f32.mxu1 %vm2535_vm9, %v3489_v50  ;;  %v2109_v58 = vsel %vm1969_vm15, 1.0, %v3489_v50 }
 0x8d9   :  { %2500 = vrcp.f32 %v1905_v23  ;;  %v2432_v55 = vpack.i.bf16 %v1865_v31, %v1864_v27 }
 0x8db   :  { %v2495_v0 = vpop.eup %2494 }
 0x8dc   :  { %v1907_v8 = vadd.f32 1.0, %v2495_v0 }
 0x8de   :  { %2502 = vrcp.f32 %v1907_v8 }
 0x8df   :  { %v2497_v9 = vpop.eup %2496 }
 0x8e0   :  { %v1908_v36 = vadd.f32 1.0, %v2497_v9 }
 0x8e2   :  { %v2499_v48 = vpop.eup %2498  ;;  %2504 = vrcp.f32 %v1908_v36 }
 0x8e3   :  { %v2501_v24 = vpop.eup %2500  ;;  %1924 = vperm.xlu1 %2430, %v2499_v48  }
 0x8e4   :  { %1919 = vperm.xlu0 %2431, %v2501_v24  }
 0x8e8   :  { %v2503_v49 = vpop.eup %2502 }
 0x8e9   :  { %1929 = vperm.xlu1 %2430, %v2503_v49  }
 0x8ec   :  { %v2505_v56 = vpop.eup %2504 }
 0x8ed   :  { %1934 = vperm.xlu0 %2431, %v2505_v56   ;;  %2433 = vrot.lane.b32.xlu1 %v2432_v55, %s2524_s18 }
 0x8f1   :  { %2438 = vrot.lane.b32.xlu0 %v2437_v20, %s2524_s18 }
 0x962   :  { %v1925_v51 = vpop.permute.xlu1 %1924 }
 0x963   :  { %v1920_v21 = vpop.permute.xlu0 %1919  ;;  %v1938_v35 = vmul.f32 %v1925_v51, %v3407_v10 }
 0x964   :  { %v1937_v46 = vmul.f32 %v1920_v21, %v3410_v5 }
 0x968   :  { %v1930_v25 = vpop.permute.xlu1 %1929 }
 0x969   :  { %v1939_v17 = vmul.f32 %v1930_v25, %v3420_v60 }
 0x96c   :  { %v2434_v28 = vpop.permute.xlu1 %2433  ;;  %v1935_v29 = vpop.permute.xlu0 %1934 }
 0x96d   :  { %v2436_v37 = vunpack.i.h.bf16 %v2434_v28  ;;  %v2435_v30 = vunpack.i.l.bf16 %v2434_v28  ;;  %v1940_v7 = vmul.f32 %v1935_v29, %v3417_v40 }
 0x96f   :  { %v1958_v59 = vsel %vm895_vm7, %v1938_v35, %v2436_v37  ;;  %v1957_v38 = vsel %vm895_vm7, %v1937_v46, %v2435_v30 }
 0x970   :  { %v2352_v26 = vpack.c.bf16 %v1958_v59, %v1957_v38  ;;  %v2439_v4 = vpop.permute.xlu0 %2438 }
 0x971   :  { %v2441_v47 = vunpack.i.h.bf16 %v2439_v4  ;;  %v2440_v18 = vunpack.i.l.bf16 %v2439_v4 }
 0x972   :  { %2353 = vmatpush3.bf16.msra.mxu1 %v2352_v26 }
 0x973   :  { %v1960_v10 = vsel %vm895_vm7, %v1940_v7, %v2441_v47  ;;  %v1959_v5 = vsel %vm895_vm7, %v1939_v17, %v2440_v18  ;;  %2354 = vmatprep.subr.bf16.mxu1 %v2534_v43 }
 0x974   :  { %v2355_v53 = vpack.c.bf16 %v1960_v10, %v1959_v5 }
 0x976   :  { %2356 = vmatpush3.bf16.msra.mxu1 %v2355_v53 }
 0x979   :  { %2289 = vmatmul.mubr.msk.f32.vlgmr.msra.gmra.mrb[12].mxu1 %vm1612_vm14, %v2109_v58 }
 0xa4c   :  { %v2041_v12 = vpop.f32.mrb[12].mxu1 }
 0xa4d   :  { %2045 = vst.msk [vmem:[%s3463_s4] sm:$0xff] %vm1598_vm13, %v2041_v12  ;;  %v2290_v40 = vpop.f32.mrb[13].mxu1 }

</bundles_post_ra>
